<compile_context>
chip_gen: v5e
topology: v5e:2x2
jax: 0.10.0
libtpu: 0.0.40
codegen_flags: <defaults>
</compile_context>

<pallas_src>
from functools import partial

import jax
import jax.numpy as jnp
from jax.experimental import pallas as pl
from jax.experimental.pallas import tpu as pltpu

# ----------------------------- "config" -------------------------------------
VOCAB_SIZE = 64
EMB_DIM = 32
HIDDEN_DIM = 32
RAND_UNIF_INIT_MAG = 0.02
TRUNC_NORM_INIT_STD = 1e-4


# --------------------------- Pallas bi-LSTM kernel ---------------------------
def _bilstm_kernel(x_ref, lens_ref, wih_ref, whh_ref, b_ref,
                   out_ref, hn_ref, cn_ref, gin_ref, *, hidden_dim):
    """One grid step = one LSTM direction (d = pl.program_id(0)).

    x_ref   : (T, B, E)   shared time-major inputs (same block for both dirs)
    lens_ref: (B, 1)      int32 valid lengths (padded batch rows have len 0)
    wih_ref : (E, 4H)     this direction's W_ih^T
    whh_ref : (H, 4H)     this direction's W_hh^T
    b_ref   : (1, 4H)     this direction's combined bias (b_ih + b_hh)
    out_ref : (T, B, H)   per-step hidden states of this direction
    hn_ref  : (B, H)      final hidden state (at last valid token)
    cn_ref  : (B, H)      final cell state
    gin_ref : (T, B, 4H)  VMEM scratch holding the hoisted input projection
    """
    d = pl.program_id(0)                 # 0 = forward, 1 = backward
    T, B, E = x_ref.shape
    H = hidden_dim

    # ---- hoisted input projection: one matmul over all T*B rows ------------
    gin = (jnp.dot(x_ref[...].reshape(T * B, E), wih_ref[...],
                   preferred_element_type=jnp.float32)
           + b_ref[...])                                   # (T*B, 4H)
    gin_ref[...] = gin.reshape(T, B, 4 * H)

    lens = lens_ref[...]                 # (B, 1), loaded once before the loop
    whh = whh_ref[...]                   # (H, 4H), loaded once

    def step(t, carry):
        h, c = carry                     # (B, H) each
        # original (un-reversed) time index for this direction
        t_idx = jnp.where(d == 0, t, T - 1 - t)

        # gates = G_in[t] + h @ W_hh^T   -> (B, 4H), 4H == 128 == one lane row
        g = gin_ref[t_idx] + jnp.dot(h, whh, preferred_element_type=jnp.float32)

        # static 32-lane sub-slices of the single (B, 128) gate vreg
        i = jax.nn.sigmoid(g[:, 0 * H:1 * H])
        f = jax.nn.sigmoid(g[:, 1 * H:2 * H])
        gg = jnp.tanh(g[:, 2 * H:3 * H])
        o = jax.nn.sigmoid(g[:, 3 * H:4 * H])

        c_new = f * c + i * gg
        h_new = o * jnp.tanh(c_new)

        # packed-sequence semantics: positions t_idx >= len neither update the
        # state nor produce output (output is zero there).
        valid = t_idx < lens                             # (B, 1) bool
        out_ref[t_idx] = jnp.where(valid, h_new, 0.0)
        return (jnp.where(valid, h_new, h), jnp.where(valid, c_new, c))

    z = jnp.zeros((B, H), jnp.float32)
    h_fin, c_fin = jax.lax.fori_loop(0, T, step, (z, z), unroll=True)

    # final states written once (not every timestep)
    hn_ref[...] = h_fin
    cn_ref[...] = c_fin


def _bilstm_pallas(x_tbe, lens_b1, w_ih_T, w_hh_T, bias):
    """Fused bidirectional LSTM over a padded, time-major batch."""
    T, Bp, E = x_tbe.shape
    H = w_hh_T.shape[1]
    kernel = partial(_bilstm_kernel, hidden_dim=H)

    out, h_n, c_n = pl.pallas_call(
        kernel,
        out_shape=(jax.ShapeDtypeStruct((2, T, Bp, H), jnp.float32),   # per-step h
                   jax.ShapeDtypeStruct((2, Bp, H), jnp.float32),      # h_n
                   jax.ShapeDtypeStruct((2, Bp, H), jnp.float32)),     # c_n
        grid_spec=pltpu.PrefetchScalarGridSpec(
            num_scalar_prefetch=0,
            grid=(2,),                                        # direction axis only
            in_specs=[
                pl.BlockSpec((T, Bp, E), lambda d: (0, 0, 0)),        # x (shared)
                pl.BlockSpec((Bp, 1), lambda d: (0, 0)),              # seq_lens
                pl.BlockSpec((None, E, 4 * H), lambda d: (d, 0, 0)),  # W_ih^T[d]
                pl.BlockSpec((None, H, 4 * H), lambda d: (d, 0, 0)),  # W_hh^T[d]
                pl.BlockSpec((None, 1, 4 * H), lambda d: (d, 0, 0)),  # bias[d]
            ],
            out_specs=(
                pl.BlockSpec((None, T, Bp, H), lambda d: (d, 0, 0, 0)),
                pl.BlockSpec((None, Bp, H), lambda d: (d, 0, 0)),
                pl.BlockSpec((None, Bp, H), lambda d: (d, 0, 0)),
            ),
            scratch_shapes=[pltpu.VMEM((T, Bp, 4 * H), jnp.float32)],  # G_in
        ),
        compiler_params=pltpu.CompilerParams(
            # directions are independent -> shard across v7x's 2 TensorCores;
            # on v5e/v6e this just runs the 2 iterations sequentially.
            dimension_semantics=("parallel",)),
    )(x_tbe, lens_b1, w_ih_T, w_hh_T, bias)
    return out, h_n, c_n


# ------------------------------ parameters -----------------------------------
def init_encoder_params(key):
    ks = jax.random.split(key, 5)
    H, E, V = HIDDEN_DIM, EMB_DIM, VOCAB_SIZE

    emb = TRUNC_NORM_INIT_STD * jax.random.normal(ks[0], (V, E), jnp.float32)

    def u(k, shape):
        return jax.random.uniform(k, shape, jnp.float32,
                                  -RAND_UNIF_INIT_MAG, RAND_UNIF_INIT_MAG)

    # PyTorch LSTM weights: weight_ih (4H, E), weight_hh (4H, H); gate order i,f,g,o.
    w_ih_f = u(ks[1], (4 * H, E))
    w_hh_f = u(ks[2], (4 * H, H))
    w_ih_b = u(ks[3], (4 * H, E))
    w_hh_b = u(ks[4], (4 * H, H))

    # init_lstm_wt: bias_ih and bias_hh are zero except forget gate = 1 each
    # -> combined bias has forget slice = 2.
    b = jnp.zeros((4 * H,), jnp.float32).at[H:2 * H].set(2.0)

    return {
        "embedding": emb,
        "w_ih_T": jnp.stack([w_ih_f.T, w_ih_b.T]),            # (2, E, 4H)
        "w_hh_T": jnp.stack([w_hh_f.T, w_hh_b.T]),            # (2, H, 4H)
        "b": jnp.stack([b, b]).reshape(2, 1, 4 * H),          # (2, 1, 4H)
    }


# ------------------------------ forward pass ----------------------------------
def encoder_forward(params, inputs_text, seq_lens, t_max=None):
    """inputs_text: (B, T) int32 token ids; seq_lens: (B,) valid lengths.

    t_max is the static pad_packed_sequence trim length (max(seq_lens)); pass
    None to return the full-T output.  Keeping it static avoids a host sync.
    """
    B, T = inputs_text.shape
    H = HIDDEN_DIM

    # time-major embedding gather: transpose the cheap int ids, not the
    # (B, T, E) activations.
    emb_tbe = jnp.take(params["embedding"], inputs_text.T, axis=0)    # (T, B, E)
    emb_tbe = emb_tbe.astype(jnp.float32)

    # pad the batch to a sublane-friendly multiple of 8; padded rows get
    # seq_len = 0 so they never update state and produce zero outputs.
    Bp = max(8, ((B + 7) // 8) * 8)
    pad = Bp - B
    x = jnp.pad(emb_tbe, ((0, 0), (0, pad), (0, 0)))
    lens = jnp.pad(seq_lens.astype(jnp.int32), (0, pad)).reshape(Bp, 1)

    out, h_n, c_n = _bilstm_pallas(
        x, lens, params["w_ih_T"], params["w_hh_T"], params["b"])

    # out: (2, T, Bp, H) -> (B, T, 2H) with [fwd, bwd] concatenated per step
    enc = out[:, :, :B]                                   # (2, T, B, H)
    enc = jnp.transpose(enc, (2, 1, 0, 3)).reshape(B, T, 2 * H)
    if t_max is not None:
        enc = enc[:, :t_max]

    h_n = h_n[:, :B]                                       # (2, B, H)
    c_n = c_n[:, :B]                                       # (2, B, H)
    return enc, (h_n, c_n)


# --------------------------- pure-JAX reference --------------------------------
def _lstm_ref_dir(x_tbe, lens, w_ih_t, w_hh_t, bias, reverse):
    T, B, E = x_tbe.shape
    H = w_hh_t.shape[0]

    def step(carry, t):
        h, c = carry
        t_idx = T - 1 - t if reverse else t
        x_t = x_tbe[t_idx]
        gates = x_t @ w_ih_t + h @ w_hh_t + bias
        i = jax.nn.sigmoid(gates[:, :H])
        f = jax.nn.sigmoid(gates[:, H:2 * H])
        g = jnp.tanh(gates[:, 2 * H:3 * H])
        o = jax.nn.sigmoid(gates[:, 3 * H:])
        c_new = f * c + i * g
        h_new = o * jnp.tanh(c_new)
        valid = (t_idx < lens)[:, None]
        h_u = jnp.where(valid, h_new, h)
        c_u = jnp.where(valid, c_new, c)
        out_t = jnp.where(valid, h_new, 0.0)
        return (h_u, c_u), out_t

    init = (jnp.zeros((B, H), jnp.float32), jnp.zeros((B, H), jnp.float32))
    (h, c), outs = jax.lax.scan(step, init, jnp.arange(T))
    if reverse:
        outs = outs[::-1]
    return outs, h, c


def encoder_forward_ref(params, inputs_text, seq_lens, t_max):
    emb = jnp.take(params["embedding"], inputs_text, axis=0)
    x = jnp.transpose(emb, (1, 0, 2)).astype(jnp.float32)
    lens = seq_lens.astype(jnp.int32)
    of, hf, cf = _lstm_ref_dir(x, lens, params["w_ih_T"][0], params["w_hh_T"][0],
                               params["b"][0], reverse=False)
    ob, hb, cb = _lstm_ref_dir(x, lens, params["w_ih_T"][1], params["w_hh_T"][1],
                               params["b"][1], reverse=True)
    enc = jnp.transpose(jnp.concatenate([of, ob], -1), (1, 0, 2))
    return enc[:, :t_max], (jnp.stack([hf, hb]), jnp.stack([cf, cb]))


# ---------------------------------- main ---------------------------------------
if __name__ == "__main__":
    key = jax.random.PRNGKey(0)
    k_param, k_tok = jax.random.split(key)

    B, T = 2, 8
    params = init_encoder_params(k_param)

    inputs_text = jax.random.randint(k_tok, (B, T), 0, VOCAB_SIZE, jnp.int32)
    seq_lens_list = [8, 5]                       # sorted descending (packed req.)
    seq_lens = jnp.array(seq_lens_list, dtype=jnp.int32)
    t_max = max(seq_lens_list)                   # static -> no device sync

    fwd = jax.jit(partial(encoder_forward, t_max=t_max))
    enc_out, (h_n, c_n) = fwd(params, inputs_text, seq_lens)
    jax.block_until_ready((enc_out, h_n, c_n))

    # sanity check against a pure-JAX reference of the same packed bi-LSTM
    enc_ref, (h_ref, c_ref) = encoder_forward_ref(params, inputs_text, seq_lens,
                                                  t_max)
    assert enc_out.shape == (B, t_max, 2 * HIDDEN_DIM)
    assert h_n.shape == (2, B, HIDDEN_DIM) and c_n.shape == (2, B, HIDDEN_DIM)
    assert jnp.allclose(enc_out, enc_ref, atol=1e-5)
    assert jnp.allclose(h_n, h_ref, atol=1e-5)
    assert jnp.allclose(c_n, c_ref, atol=1e-5)

    print("KERNEL_OK")
</pallas_src>

<mosaic_0001>
module attributes {stable_mosaic.version = 11 : i64} {
  func.func @_bilstm_kernel(%arg0: i32, %arg1: memref<8x8x32xf32, #tpu.memory_space<vmem>>, %arg2: memref<8x1xi32, #tpu.memory_space<vmem>>, %arg3: memref<1x32x128xf32, #tpu.memory_space<vmem>>, %arg4: memref<1x32x128xf32, #tpu.memory_space<vmem>>, %arg5: memref<1x1x128xf32, #tpu.memory_space<vmem>>, %arg6: memref<1x8x8x32xf32, #tpu.memory_space<vmem>>, %arg7: memref<1x8x32xf32, #tpu.memory_space<vmem>>, %arg8: memref<1x8x32xf32, #tpu.memory_space<vmem>>, %arg9: memref<8x8x128xf32, #tpu.memory_space<vmem>>) attributes {dimension_semantics = [#tpu.dimension_semantics<parallel>], iteration_bounds = array<i64: 2>, scalar_prefetch = 0 : i64, scratch_operands = 1 : i64, tpu.core_type = #tpu.core_type<tc>, window_params = [{pipeline_mode = #tpu.pipeline_mode<synchronous>, transform_indices = @transform_0, window_bounds = array<i64: 8, 8, 32>}, {pipeline_mode = #tpu.pipeline_mode<synchronous>, transform_indices = @transform_1, window_bounds = array<i64: 8, 1>}, {transform_indices = @transform_2, window_bounds = array<i64: 1, 32, 128>}, {transform_indices = @transform_3, window_bounds = array<i64: 1, 32, 128>}, {transform_indices = @transform_4, window_bounds = array<i64: 1, 1, 128>}, {transform_indices = @transform_5, window_bounds = array<i64: 1, 8, 8, 32>}, {transform_indices = @transform_6, window_bounds = array<i64: 1, 8, 32>}, {transform_indices = @transform_7, window_bounds = array<i64: 1, 8, 32>}]} {
    %c0 = arith.constant 0 : index
    %c0_0 = arith.constant 0 : index
    %c0_1 = arith.constant 0 : index
    %0 = vector.load %arg1[%c0, %c0_0, %c0_1] : memref<8x8x32xf32, #tpu.memory_space<vmem>>, vector<8x8x32xf32>
    %1 = vector.shape_cast %0 : vector<8x8x32xf32> to vector<64x32xf32>
    %c0_2 = arith.constant 0 : index
    %c0_3 = arith.constant 0 : index
    %c0_4 = arith.constant 0 : index
    %2 = vector.load %arg3[%c0_2, %c0_3, %c0_4] : memref<1x32x128xf32, #tpu.memory_space<vmem>>, vector<1x32x128xf32>
    %3 = vector.shape_cast %2 : vector<1x32x128xf32> to vector<32x128xf32>
    %cst = arith.constant dense<0.000000e+00> : vector<64x128xf32>
    %4 = tpu.matmul %1, %3, %cst {dimension_numbers = #tpu.dot_dimension_numbers<[1], [0], [0], [1], [0, 0, 1, 1], [], []>} : vector<64x32xf32>, vector<32x128xf32>, vector<64x128xf32> -> vector<64x128xf32>
    %c0_5 = arith.constant 0 : index
    %c0_6 = arith.constant 0 : index
    %c0_7 = arith.constant 0 : index
    %5 = vector.load %arg5[%c0_5, %c0_6, %c0_7] : memref<1x1x128xf32, #tpu.memory_space<vmem>>, vector<1x1x128xf32>
    %6 = vector.shape_cast %5 : vector<1x1x128xf32> to vector<1x128xf32>
    %7 = vector.broadcast %6 : vector<1x128xf32> to vector<64x128xf32>
    %8 = arith.addf %4, %7 : vector<64x128xf32>
    %9 = vector.shape_cast %8 : vector<64x128xf32> to vector<8x8x128xf32>
    %c0_8 = arith.constant 0 : index
    %c0_9 = arith.constant 0 : index
    %c0_10 = arith.constant 0 : index
    %10 = vector.load %arg9[%c0_8, %c0_9, %c0_10] : memref<8x8x128xf32, #tpu.memory_space<vmem>>, vector<8x8x128xf32>
    tpu.vector_store %arg9[%c0_8, %c0_9, %c0_10], %9 {strides = array<i32>} : memref<8x8x128xf32, #tpu.memory_space<vmem>>, vector<8x8x128xf32>,
    %c0_11 = arith.constant 0 : index
    %c0_12 = arith.constant 0 : index
    %11 = vector.load %arg2[%c0_11, %c0_12] : memref<8x1xi32, #tpu.memory_space<vmem>>, vector<8x1xi32>
    %c0_13 = arith.constant 0 : index
    %c0_14 = arith.constant 0 : index
    %c0_15 = arith.constant 0 : index
    %12 = vector.load %arg4[%c0_13, %c0_14, %c0_15] : memref<1x32x128xf32, #tpu.memory_space<vmem>>, vector<1x32x128xf32>
    %13 = vector.shape_cast %12 : vector<1x32x128xf32> to vector<32x128xf32>
    %cst_16 = arith.constant 0.000000e+00 : f32
    %14 = vector.broadcast %cst_16 : f32 to vector<8x32xf32>
    %c0_i32 = arith.constant 0 : i32
    %c0_i32_17 = arith.constant 0 : i32
    %15 = arith.cmpi eq, %arg0, %c0_i32_17 : i32
    %c7_i32 = arith.constant 7 : i32
    %16 = arith.subi %c7_i32, %c0_i32 : i32
    %17 = arith.select %15, %c0_i32, %16 : i32
    %18 = arith.index_cast %17 : i32 to index
    %c0_18 = arith.constant 0 : index
    %c0_19 = arith.constant 0 : index
    %19 = vector.load %arg9[%18, %c0_18, %c0_19] : memref<8x8x128xf32, #tpu.memory_space<vmem>>, vector<1x8x128xf32>
    %20 = vector.shape_cast %19 : vector<1x8x128xf32> to vector<8x128xf32>
    %cst_20 = arith.constant dense<0.000000e+00> : vector<8x128xf32>
    %21 = tpu.matmul %14, %13, %cst_20 {dimension_numbers = #tpu.dot_dimension_numbers<[1], [0], [0], [1], [0, 0, 1, 1], [], []>} : vector<8x32xf32>, vector<32x128xf32>, vector<8x128xf32> -> vector<8x128xf32>
    %22 = arith.addf %20, %21 : vector<8x128xf32>
    %23 = vector.extract_strided_slice %22 {offsets = [0, 0], sizes = [8, 32], strides = [1, 1]} : vector<8x128xf32> to vector<8x32xf32>
    %24 = arith.negf %23 : vector<8x32xf32>
    %25 = math.exp %24 : vector<8x32xf32>
    %cst_21 = arith.constant 1.000000e+00 : f32
    %26 = vector.broadcast %cst_21 : f32 to vector<8x32xf32>
    %27 = arith.addf %26, %25 : vector<8x32xf32>
    %28 = arith.divf %26, %27 : vector<8x32xf32>
    %29 = vector.extract_strided_slice %22 {offsets = [0, 32], sizes = [8, 32], strides = [1, 1]} : vector<8x128xf32> to vector<8x32xf32>
    %30 = arith.negf %29 : vector<8x32xf32>
    %31 = math.exp %30 : vector<8x32xf32>
    %cst_22 = arith.constant 1.000000e+00 : f32
    %32 = vector.broadcast %cst_22 : f32 to vector<8x32xf32>
    %33 = arith.addf %32, %31 : vector<8x32xf32>
    %34 = arith.divf %32, %33 : vector<8x32xf32>
    %35 = vector.extract_strided_slice %22 {offsets = [0, 64], sizes = [8, 32], strides = [1, 1]} : vector<8x128xf32> to vector<8x32xf32>
    %36 = math.tanh %35 : vector<8x32xf32>
    %37 = vector.extract_strided_slice %22 {offsets = [0, 96], sizes = [8, 32], strides = [1, 1]} : vector<8x128xf32> to vector<8x32xf32>
    %38 = arith.negf %37 : vector<8x32xf32>
    %39 = math.exp %38 : vector<8x32xf32>
    %cst_23 = arith.constant 1.000000e+00 : f32
    %40 = vector.broadcast %cst_23 : f32 to vector<8x32xf32>
    %41 = arith.addf %40, %39 : vector<8x32xf32>
    %42 = arith.divf %40, %41 : vector<8x32xf32>
    %43 = arith.mulf %34, %14 : vector<8x32xf32>
    %44 = arith.mulf %28, %36 : vector<8x32xf32>
    %45 = arith.addf %43, %44 : vector<8x32xf32>
    %46 = math.tanh %45 : vector<8x32xf32>
    %47 = arith.mulf %42, %46 : vector<8x32xf32>
    %48 = vector.broadcast %17 : i32 to vector<8x1xi32>
    %49 = arith.cmpi slt, %48, %11 : vector<8x1xi32>
    %cst_24 = arith.constant 0.000000e+00 : f32
    %50 = vector.shape_cast %49 : vector<8x1xi1> to vector<8x1xi1>
    %51 = vector.broadcast %50 : vector<8x1xi1> to vector<8x32xi1>
    %52 = vector.broadcast %cst_24 : f32 to vector<8x32xf32>
    %53 = arith.select %51, %47, %52 : vector<8x32xi1>, vector<8x32xf32>
    %c0_25 = arith.constant 0 : index
    %54 = arith.index_cast %17 : i32 to index
    %c0_26 = arith.constant 0 : index
    %c0_27 = arith.constant 0 : index
    %55 = vector.load %arg6[%c0_25, %54, %c0_26, %c0_27] : memref<1x8x8x32xf32, #tpu.memory_space<vmem>>, vector<1x1x8x32xf32>
    %56 = vector.shape_cast %55 : vector<1x1x8x32xf32> to vector<8x32xf32>
    %57 = vector.shape_cast %53 : vector<8x32xf32> to vector<1x1x8x32xf32>
    tpu.vector_store %arg6[%c0_25, %54, %c0_26, %c0_27], %57 {strides = array<i32>} : memref<1x8x8x32xf32, #tpu.memory_space<vmem>>, vector<1x1x8x32xf32>,
    %58 = vector.shape_cast %49 : vector<8x1xi1> to vector<8x1xi1>
    %59 = vector.broadcast %58 : vector<8x1xi1> to vector<8x32xi1>
    %60 = arith.select %59, %47, %14 : vector<8x32xi1>, vector<8x32xf32>
    %61 = vector.shape_cast %49 : vector<8x1xi1> to vector<8x1xi1>
    %62 = vector.broadcast %61 : vector<8x1xi1> to vector<8x32xi1>
    %63 = arith.select %62, %45, %14 : vector<8x32xi1>, vector<8x32xf32>
    %c1_i32 = arith.constant 1 : i32
    %c0_i32_28 = arith.constant 0 : i32
    %64 = arith.cmpi eq, %arg0, %c0_i32_28 : i32
    %c7_i32_29 = arith.constant 7 : i32
    %65 = arith.subi %c7_i32_29, %c1_i32 : i32
    %66 = arith.select %64, %c1_i32, %65 : i32
    %67 = arith.index_cast %66 : i32 to index
    %c0_30 = arith.constant 0 : index
    %c0_31 = arith.constant 0 : index
    %68 = vector.load %arg9[%67, %c0_30, %c0_31] : memref<8x8x128xf32, #tpu.memory_space<vmem>>, vector<1x8x128xf32>
    %69 = vector.shape_cast %68 : vector<1x8x128xf32> to vector<8x128xf32>
    %cst_32 = arith.constant dense<0.000000e+00> : vector<8x128xf32>
    %70 = tpu.matmul %60, %13, %cst_32 {dimension_numbers = #tpu.dot_dimension_numbers<[1], [0], [0], [1], [0, 0, 1, 1], [], []>} : vector<8x32xf32>, vector<32x128xf32>, vector<8x128xf32> -> vector<8x128xf32>
    %71 = arith.addf %69, %70 : vector<8x128xf32>
    %72 = vector.extract_strided_slice %71 {offsets = [0, 0], sizes = [8, 32], strides = [1, 1]} : vector<8x128xf32> to vector<8x32xf32>
    %73 = arith.negf %72 : vector<8x32xf32>
    %74 = math.exp %73 : vector<8x32xf32>
    %cst_33 = arith.constant 1.000000e+00 : f32
    %75 = vector.broadcast %cst_33 : f32 to vector<8x32xf32>
    %76 = arith.addf %75, %74 : vector<8x32xf32>
    %77 = arith.divf %75, %76 : vector<8x32xf32>
    %78 = vector.extract_strided_slice %71 {offsets = [0, 32], sizes = [8, 32], strides = [1, 1]} : vector<8x128xf32> to vector<8x32xf32>
    %79 = arith.negf %78 : vector<8x32xf32>
    %80 = math.exp %79 : vector<8x32xf32>
    %cst_34 = arith.constant 1.000000e+00 : f32
    %81 = vector.broadcast %cst_34 : f32 to vector<8x32xf32>
    %82 = arith.addf %81, %80 : vector<8x32xf32>
    %83 = arith.divf %81, %82 : vector<8x32xf32>
    %84 = vector.extract_strided_slice %71 {offsets = [0, 64], sizes = [8, 32], strides = [1, 1]} : vector<8x128xf32> to vector<8x32xf32>
    %85 = math.tanh %84 : vector<8x32xf32>
    %86 = vector.extract_strided_slice %71 {offsets = [0, 96], sizes = [8, 32], strides = [1, 1]} : vector<8x128xf32> to vector<8x32xf32>
    %87 = arith.negf %86 : vector<8x32xf32>
    %88 = math.exp %87 : vector<8x32xf32>
    %cst_35 = arith.constant 1.000000e+00 : f32
    %89 = vector.broadcast %cst_35 : f32 to vector<8x32xf32>
    %90 = arith.addf %89, %88 : vector<8x32xf32>
    %91 = arith.divf %89, %90 : vector<8x32xf32>
    %92 = arith.mulf %83, %63 : vector<8x32xf32>
    %93 = arith.mulf %77, %85 : vector<8x32xf32>
    %94 = arith.addf %92, %93 : vector<8x32xf32>
    %95 = math.tanh %94 : vector<8x32xf32>
    %96 = arith.mulf %91, %95 : vector<8x32xf32>
    %97 = vector.broadcast %66 : i32 to vector<8x1xi32>
    %98 = arith.cmpi slt, %97, %11 : vector<8x1xi32>
    %cst_36 = arith.constant 0.000000e+00 : f32
    %99 = vector.shape_cast %98 : vector<8x1xi1> to vector<8x1xi1>
    %100 = vector.broadcast %99 : vector<8x1xi1> to vector<8x32xi1>
    %101 = vector.broadcast %cst_36 : f32 to vector<8x32xf32>
    %102 = arith.select %100, %96, %101 : vector<8x32xi1>, vector<8x32xf32>
    %c0_37 = arith.constant 0 : index
    %103 = arith.index_cast %66 : i32 to index
    %c0_38 = arith.constant 0 : index
    %c0_39 = arith.constant 0 : index
    %104 = vector.load %arg6[%c0_37, %103, %c0_38, %c0_39] : memref<1x8x8x32xf32, #tpu.memory_space<vmem>>, vector<1x1x8x32xf32>
    %105 = vector.shape_cast %104 : vector<1x1x8x32xf32> to vector<8x32xf32>
    %106 = vector.shape_cast %102 : vector<8x32xf32> to vector<1x1x8x32xf32>
    tpu.vector_store %arg6[%c0_37, %103, %c0_38, %c0_39], %106 {strides = array<i32>} : memref<1x8x8x32xf32, #tpu.memory_space<vmem>>, vector<1x1x8x32xf32>,
    %107 = vector.shape_cast %98 : vector<8x1xi1> to vector<8x1xi1>
    %108 = vector.broadcast %107 : vector<8x1xi1> to vector<8x32xi1>
    %109 = arith.select %108, %96, %60 : vector<8x32xi1>, vector<8x32xf32>
    %110 = vector.shape_cast %98 : vector<8x1xi1> to vector<8x1xi1>
    %111 = vector.broadcast %110 : vector<8x1xi1> to vector<8x32xi1>
    %112 = arith.select %111, %94, %63 : vector<8x32xi1>, vector<8x32xf32>
    %c2_i32 = arith.constant 2 : i32
    %c0_i32_40 = arith.constant 0 : i32
    %113 = arith.cmpi eq, %arg0, %c0_i32_40 : i32
    %c7_i32_41 = arith.constant 7 : i32
    %114 = arith.subi %c7_i32_41, %c2_i32 : i32
    %115 = arith.select %113, %c2_i32, %114 : i32
    %116 = arith.index_cast %115 : i32 to index
    %c0_42 = arith.constant 0 : index
    %c0_43 = arith.constant 0 : index
    %117 = vector.load %arg9[%116, %c0_42, %c0_43] : memref<8x8x128xf32, #tpu.memory_space<vmem>>, vector<1x8x128xf32>
    %118 = vector.shape_cast %117 : vector<1x8x128xf32> to vector<8x128xf32>
    %cst_44 = arith.constant dense<0.000000e+00> : vector<8x128xf32>
    %119 = tpu.matmul %109, %13, %cst_44 {dimension_numbers = #tpu.dot_dimension_numbers<[1], [0], [0], [1], [0, 0, 1, 1], [], []>} : vector<8x32xf32>, vector<32x128xf32>, vector<8x128xf32> -> vector<8x128xf32>
    %120 = arith.addf %118, %119 : vector<8x128xf32>
    %121 = vector.extract_strided_slice %120 {offsets = [0, 0], sizes = [8, 32], strides = [1, 1]} : vector<8x128xf32> to vector<8x32xf32>
    %122 = arith.negf %121 : vector<8x32xf32>
    %123 = math.exp %122 : vector<8x32xf32>
    %cst_45 = arith.constant 1.000000e+00 : f32
    %124 = vector.broadcast %cst_45 : f32 to vector<8x32xf32>
    %125 = arith.addf %124, %123 : vector<8x32xf32>
    %126 = arith.divf %124, %125 : vector<8x32xf32>
    %127 = vector.extract_strided_slice %120 {offsets = [0, 32], sizes = [8, 32], strides = [1, 1]} : vector<8x128xf32> to vector<8x32xf32>
    %128 = arith.negf %127 : vector<8x32xf32>
    %129 = math.exp %128 : vector<8x32xf32>
    %cst_46 = arith.constant 1.000000e+00 : f32
    %130 = vector.broadcast %cst_46 : f32 to vector<8x32xf32>
    %131 = arith.addf %130, %129 : vector<8x32xf32>
    %132 = arith.divf %130, %131 : vector<8x32xf32>
    %133 = vector.extract_strided_slice %120 {offsets = [0, 64], sizes = [8, 32], strides = [1, 1]} : vector<8x128xf32> to vector<8x32xf32>
    %134 = math.tanh %133 : vector<8x32xf32>
    %135 = vector.extract_strided_slice %120 {offsets = [0, 96], sizes = [8, 32], strides = [1, 1]} : vector<8x128xf32> to vector<8x32xf32>
    %136 = arith.negf %135 : vector<8x32xf32>
    %137 = math.exp %136 : vector<8x32xf32>
    %cst_47 = arith.constant 1.000000e+00 : f32
    %138 = vector.broadcast %cst_47 : f32 to vector<8x32xf32>
    %139 = arith.addf %138, %137 : vector<8x32xf32>
    %140 = arith.divf %138, %139 : vector<8x32xf32>
    %141 = arith.mulf %132, %112 : vector<8x32xf32>
    %142 = arith.mulf %126, %134 : vector<8x32xf32>
    %143 = arith.addf %141, %142 : vector<8x32xf32>
    %144 = math.tanh %143 : vector<8x32xf32>
    %145 = arith.mulf %140, %144 : vector<8x32xf32>
    %146 = vector.broadcast %115 : i32 to vector<8x1xi32>
    %147 = arith.cmpi slt, %146, %11 : vector<8x1xi32>
    %cst_48 = arith.constant 0.000000e+00 : f32
    %148 = vector.shape_cast %147 : vector<8x1xi1> to vector<8x1xi1>
    %149 = vector.broadcast %148 : vector<8x1xi1> to vector<8x32xi1>
    %150 = vector.broadcast %cst_48 : f32 to vector<8x32xf32>
    %151 = arith.select %149, %145, %150 : vector<8x32xi1>, vector<8x32xf32>
    %c0_49 = arith.constant 0 : index
    %152 = arith.index_cast %115 : i32 to index
    %c0_50 = arith.constant 0 : index
    %c0_51 = arith.constant 0 : index
    %153 = vector.load %arg6[%c0_49, %152, %c0_50, %c0_51] : memref<1x8x8x32xf32, #tpu.memory_space<vmem>>, vector<1x1x8x32xf32>
    %154 = vector.shape_cast %153 : vector<1x1x8x32xf32> to vector<8x32xf32>
    %155 = vector.shape_cast %151 : vector<8x32xf32> to vector<1x1x8x32xf32>
    tpu.vector_store %arg6[%c0_49, %152, %c0_50, %c0_51], %155 {strides = array<i32>} : memref<1x8x8x32xf32, #tpu.memory_space<vmem>>, vector<1x1x8x32xf32>,
    %156 = vector.shape_cast %147 : vector<8x1xi1> to vector<8x1xi1>
    %157 = vector.broadcast %156 : vector<8x1xi1> to vector<8x32xi1>
    %158 = arith.select %157, %145, %109 : vector<8x32xi1>, vector<8x32xf32>
    %159 = vector.shape_cast %147 : vector<8x1xi1> to vector<8x1xi1>
    %160 = vector.broadcast %159 : vector<8x1xi1> to vector<8x32xi1>
    %161 = arith.select %160, %143, %112 : vector<8x32xi1>, vector<8x32xf32>
    %c3_i32 = arith.constant 3 : i32
    %c0_i32_52 = arith.constant 0 : i32
    %162 = arith.cmpi eq, %arg0, %c0_i32_52 : i32
    %c7_i32_53 = arith.constant 7 : i32
    %163 = arith.subi %c7_i32_53, %c3_i32 : i32
    %164 = arith.select %162, %c3_i32, %163 : i32
    %165 = arith.index_cast %164 : i32 to index
    %c0_54 = arith.constant 0 : index
    %c0_55 = arith.constant 0 : index
    %166 = vector.load %arg9[%165, %c0_54, %c0_55] : memref<8x8x128xf32, #tpu.memory_space<vmem>>, vector<1x8x128xf32>
    %167 = vector.shape_cast %166 : vector<1x8x128xf32> to vector<8x128xf32>
    %cst_56 = arith.constant dense<0.000000e+00> : vector<8x128xf32>
    %168 = tpu.matmul %158, %13, %cst_56 {dimension_numbers = #tpu.dot_dimension_numbers<[1], [0], [0], [1], [0, 0, 1, 1], [], []>} : vector<8x32xf32>, vector<32x128xf32>, vector<8x128xf32> -> vector<8x128xf32>
    %169 = arith.addf %167, %168 : vector<8x128xf32>
    %170 = vector.extract_strided_slice %169 {offsets = [0, 0], sizes = [8, 32], strides = [1, 1]} : vector<8x128xf32> to vector<8x32xf32>
    %171 = arith.negf %170 : vector<8x32xf32>
    %172 = math.exp %171 : vector<8x32xf32>
    %cst_57 = arith.constant 1.000000e+00 : f32
    %173 = vector.broadcast %cst_57 : f32 to vector<8x32xf32>
    %174 = arith.addf %173, %172 : vector<8x32xf32>
    %175 = arith.divf %173, %174 : vector<8x32xf32>
    %176 = vector.extract_strided_slice %169 {offsets = [0, 32], sizes = [8, 32], strides = [1, 1]} : vector<8x128xf32> to vector<8x32xf32>
    %177 = arith.negf %176 : vector<8x32xf32>
    %178 = math.exp %177 : vector<8x32xf32>
    %cst_58 = arith.constant 1.000000e+00 : f32
    %179 = vector.broadcast %cst_58 : f32 to vector<8x32xf32>
    %180 = arith.addf %179, %178 : vector<8x32xf32>
    %181 = arith.divf %179, %180 : vector<8x32xf32>
    %182 = vector.extract_strided_slice %169 {offsets = [0, 64], sizes = [8, 32], strides = [1, 1]} : vector<8x128xf32> to vector<8x32xf32>
    %183 = math.tanh %182 : vector<8x32xf32>
    %184 = vector.extract_strided_slice %169 {offsets = [0, 96], sizes = [8, 32], strides = [1, 1]} : vector<8x128xf32> to vector<8x32xf32>
    %185 = arith.negf %184 : vector<8x32xf32>
    %186 = math.exp %185 : vector<8x32xf32>
    %cst_59 = arith.constant 1.000000e+00 : f32
    %187 = vector.broadcast %cst_59 : f32 to vector<8x32xf32>
    %188 = arith.addf %187, %186 : vector<8x32xf32>
    %189 = arith.divf %187, %188 : vector<8x32xf32>
    %190 = arith.mulf %181, %161 : vector<8x32xf32>
    %191 = arith.mulf %175, %183 : vector<8x32xf32>
    %192 = arith.addf %190, %191 : vector<8x32xf32>
    %193 = math.tanh %192 : vector<8x32xf32>
    %194 = arith.mulf %189, %193 : vector<8x32xf32>
    %195 = vector.broadcast %164 : i32 to vector<8x1xi32>
    %196 = arith.cmpi slt, %195, %11 : vector<8x1xi32>
    %cst_60 = arith.constant 0.000000e+00 : f32
    %197 = vector.shape_cast %196 : vector<8x1xi1> to vector<8x1xi1>
    %198 = vector.broadcast %197 : vector<8x1xi1> to vector<8x32xi1>
    %199 = vector.broadcast %cst_60 : f32 to vector<8x32xf32>
    %200 = arith.select %198, %194, %199 : vector<8x32xi1>, vector<8x32xf32>
    %c0_61 = arith.constant 0 : index
    %201 = arith.index_cast %164 : i32 to index
    %c0_62 = arith.constant 0 : index
    %c0_63 = arith.constant 0 : index
    %202 = vector.load %arg6[%c0_61, %201, %c0_62, %c0_63] : memref<1x8x8x32xf32, #tpu.memory_space<vmem>>, vector<1x1x8x32xf32>
    %203 = vector.shape_cast %202 : vector<1x1x8x32xf32> to vector<8x32xf32>
    %204 = vector.shape_cast %200 : vector<8x32xf32> to vector<1x1x8x32xf32>
    tpu.vector_store %arg6[%c0_61, %201, %c0_62, %c0_63], %204 {strides = array<i32>} : memref<1x8x8x32xf32, #tpu.memory_space<vmem>>, vector<1x1x8x32xf32>,
    %205 = vector.shape_cast %196 : vector<8x1xi1> to vector<8x1xi1>
    %206 = vector.broadcast %205 : vector<8x1xi1> to vector<8x32xi1>
    %207 = arith.select %206, %194, %158 : vector<8x32xi1>, vector<8x32xf32>
    %208 = vector.shape_cast %196 : vector<8x1xi1> to vector<8x1xi1>
    %209 = vector.broadcast %208 : vector<8x1xi1> to vector<8x32xi1>
    %210 = arith.select %209, %192, %161 : vector<8x32xi1>, vector<8x32xf32>
    %c4_i32 = arith.constant 4 : i32
    %c0_i32_64 = arith.constant 0 : i32
    %211 = arith.cmpi eq, %arg0, %c0_i32_64 : i32
    %c7_i32_65 = arith.constant 7 : i32
    %212 = arith.subi %c7_i32_65, %c4_i32 : i32
    %213 = arith.select %211, %c4_i32, %212 : i32
    %214 = arith.index_cast %213 : i32 to index
    %c0_66 = arith.constant 0 : index
    %c0_67 = arith.constant 0 : index
    %215 = vector.load %arg9[%214, %c0_66, %c0_67] : memref<8x8x128xf32, #tpu.memory_space<vmem>>, vector<1x8x128xf32>
    %216 = vector.shape_cast %215 : vector<1x8x128xf32> to vector<8x128xf32>
    %cst_68 = arith.constant dense<0.000000e+00> : vector<8x128xf32>
    %217 = tpu.matmul %207, %13, %cst_68 {dimension_numbers = #tpu.dot_dimension_numbers<[1], [0], [0], [1], [0, 0, 1, 1], [], []>} : vector<8x32xf32>, vector<32x128xf32>, vector<8x128xf32> -> vector<8x128xf32>
    %218 = arith.addf %216, %217 : vector<8x128xf32>
    %219 = vector.extract_strided_slice %218 {offsets = [0, 0], sizes = [8, 32], strides = [1, 1]} : vector<8x128xf32> to vector<8x32xf32>
    %220 = arith.negf %219 : vector<8x32xf32>
    %221 = math.exp %220 : vector<8x32xf32>
    %cst_69 = arith.constant 1.000000e+00 : f32
    %222 = vector.broadcast %cst_69 : f32 to vector<8x32xf32>
    %223 = arith.addf %222, %221 : vector<8x32xf32>
    %224 = arith.divf %222, %223 : vector<8x32xf32>
    %225 = vector.extract_strided_slice %218 {offsets = [0, 32], sizes = [8, 32], strides = [1, 1]} : vector<8x128xf32> to vector<8x32xf32>
    %226 = arith.negf %225 : vector<8x32xf32>
    %227 = math.exp %226 : vector<8x32xf32>
    %cst_70 = arith.constant 1.000000e+00 : f32
    %228 = vector.broadcast %cst_70 : f32 to vector<8x32xf32>
    %229 = arith.addf %228, %227 : vector<8x32xf32>
    %230 = arith.divf %228, %229 : vector<8x32xf32>
    %231 = vector.extract_strided_slice %218 {offsets = [0, 64], sizes = [8, 32], strides = [1, 1]} : vector<8x128xf32> to vector<8x32xf32>
    %232 = math.tanh %231 : vector<8x32xf32>
    %233 = vector.extract_strided_slice %218 {offsets = [0, 96], sizes = [8, 32], strides = [1, 1]} : vector<8x128xf32> to vector<8x32xf32>
    %234 = arith.negf %233 : vector<8x32xf32>
    %235 = math.exp %234 : vector<8x32xf32>
    %cst_71 = arith.constant 1.000000e+00 : f32
    %236 = vector.broadcast %cst_71 : f32 to vector<8x32xf32>
    %237 = arith.addf %236, %235 : vector<8x32xf32>
    %238 = arith.divf %236, %237 : vector<8x32xf32>
    %239 = arith.mulf %230, %210 : vector<8x32xf32>
    %240 = arith.mulf %224, %232 : vector<8x32xf32>
    %241 = arith.addf %239, %240 : vector<8x32xf32>
    %242 = math.tanh %241 : vector<8x32xf32>
    %243 = arith.mulf %238, %242 : vector<8x32xf32>
    %244 = vector.broadcast %213 : i32 to vector<8x1xi32>
    %245 = arith.cmpi slt, %244, %11 : vector<8x1xi32>
    %cst_72 = arith.constant 0.000000e+00 : f32
    %246 = vector.shape_cast %245 : vector<8x1xi1> to vector<8x1xi1>
    %247 = vector.broadcast %246 : vector<8x1xi1> to vector<8x32xi1>
    %248 = vector.broadcast %cst_72 : f32 to vector<8x32xf32>
    %249 = arith.select %247, %243, %248 : vector<8x32xi1>, vector<8x32xf32>
    %c0_73 = arith.constant 0 : index
    %250 = arith.index_cast %213 : i32 to index
    %c0_74 = arith.constant 0 : index
    %c0_75 = arith.constant 0 : index
    %251 = vector.load %arg6[%c0_73, %250, %c0_74, %c0_75] : memref<1x8x8x32xf32, #tpu.memory_space<vmem>>, vector<1x1x8x32xf32>
    %252 = vector.shape_cast %251 : vector<1x1x8x32xf32> to vector<8x32xf32>
    %253 = vector.shape_cast %249 : vector<8x32xf32> to vector<1x1x8x32xf32>
    tpu.vector_store %arg6[%c0_73, %250, %c0_74, %c0_75], %253 {strides = array<i32>} : memref<1x8x8x32xf32, #tpu.memory_space<vmem>>, vector<1x1x8x32xf32>,
    %254 = vector.shape_cast %245 : vector<8x1xi1> to vector<8x1xi1>
    %255 = vector.broadcast %254 : vector<8x1xi1> to vector<8x32xi1>
    %256 = arith.select %255, %243, %207 : vector<8x32xi1>, vector<8x32xf32>
    %257 = vector.shape_cast %245 : vector<8x1xi1> to vector<8x1xi1>
    %258 = vector.broadcast %257 : vector<8x1xi1> to vector<8x32xi1>
    %259 = arith.select %258, %241, %210 : vector<8x32xi1>, vector<8x32xf32>
    %c5_i32 = arith.constant 5 : i32
    %c0_i32_76 = arith.constant 0 : i32
    %260 = arith.cmpi eq, %arg0, %c0_i32_76 : i32
    %c7_i32_77 = arith.constant 7 : i32
    %261 = arith.subi %c7_i32_77, %c5_i32 : i32
    %262 = arith.select %260, %c5_i32, %261 : i32
    %263 = arith.index_cast %262 : i32 to index
    %c0_78 = arith.constant 0 : index
    %c0_79 = arith.constant 0 : index
    %264 = vector.load %arg9[%263, %c0_78, %c0_79] : memref<8x8x128xf32, #tpu.memory_space<vmem>>, vector<1x8x128xf32>
    %265 = vector.shape_cast %264 : vector<1x8x128xf32> to vector<8x128xf32>
    %cst_80 = arith.constant dense<0.000000e+00> : vector<8x128xf32>
    %266 = tpu.matmul %256, %13, %cst_80 {dimension_numbers = #tpu.dot_dimension_numbers<[1], [0], [0], [1], [0, 0, 1, 1], [], []>} : vector<8x32xf32>, vector<32x128xf32>, vector<8x128xf32> -> vector<8x128xf32>
    %267 = arith.addf %265, %266 : vector<8x128xf32>
    %268 = vector.extract_strided_slice %267 {offsets = [0, 0], sizes = [8, 32], strides = [1, 1]} : vector<8x128xf32> to vector<8x32xf32>
    %269 = arith.negf %268 : vector<8x32xf32>
    %270 = math.exp %269 : vector<8x32xf32>
    %cst_81 = arith.constant 1.000000e+00 : f32
    %271 = vector.broadcast %cst_81 : f32 to vector<8x32xf32>
    %272 = arith.addf %271, %270 : vector<8x32xf32>
    %273 = arith.divf %271, %272 : vector<8x32xf32>
    %274 = vector.extract_strided_slice %267 {offsets = [0, 32], sizes = [8, 32], strides = [1, 1]} : vector<8x128xf32> to vector<8x32xf32>
    %275 = arith.negf %274 : vector<8x32xf32>
    %276 = math.exp %275 : vector<8x32xf32>
    %cst_82 = arith.constant 1.000000e+00 : f32
    %277 = vector.broadcast %cst_82 : f32 to vector<8x32xf32>
    %278 = arith.addf %277, %276 : vector<8x32xf32>
    %279 = arith.divf %277, %278 : vector<8x32xf32>
    %280 = vector.extract_strided_slice %267 {offsets = [0, 64], sizes = [8, 32], strides = [1, 1]} : vector<8x128xf32> to vector<8x32xf32>
    %281 = math.tanh %280 : vector<8x32xf32>
    %282 = vector.extract_strided_slice %267 {offsets = [0, 96], sizes = [8, 32], strides = [1, 1]} : vector<8x128xf32> to vector<8x32xf32>
    %283 = arith.negf %282 : vector<8x32xf32>
    %284 = math.exp %283 : vector<8x32xf32>
    %cst_83 = arith.constant 1.000000e+00 : f32
    %285 = vector.broadcast %cst_83 : f32 to vector<8x32xf32>
    %286 = arith.addf %285, %284 : vector<8x32xf32>
    %287 = arith.divf %285, %286 : vector<8x32xf32>
    %288 = arith.mulf %279, %259 : vector<8x32xf32>
    %289 = arith.mulf %273, %281 : vector<8x32xf32>
    %290 = arith.addf %288, %289 : vector<8x32xf32>
    %291 = math.tanh %290 : vector<8x32xf32>
    %292 = arith.mulf %287, %291 : vector<8x32xf32>
    %293 = vector.broadcast %262 : i32 to vector<8x1xi32>
    %294 = arith.cmpi slt, %293, %11 : vector<8x1xi32>
    %cst_84 = arith.constant 0.000000e+00 : f32
    %295 = vector.shape_cast %294 : vector<8x1xi1> to vector<8x1xi1>
    %296 = vector.broadcast %295 : vector<8x1xi1> to vector<8x32xi1>
    %297 = vector.broadcast %cst_84 : f32 to vector<8x32xf32>
    %298 = arith.select %296, %292, %297 : vector<8x32xi1>, vector<8x32xf32>
    %c0_85 = arith.constant 0 : index
    %299 = arith.index_cast %262 : i32 to index
    %c0_86 = arith.constant 0 : index
    %c0_87 = arith.constant 0 : index
    %300 = vector.load %arg6[%c0_85, %299, %c0_86, %c0_87] : memref<1x8x8x32xf32, #tpu.memory_space<vmem>>, vector<1x1x8x32xf32>
    %301 = vector.shape_cast %300 : vector<1x1x8x32xf32> to vector<8x32xf32>
    %302 = vector.shape_cast %298 : vector<8x32xf32> to vector<1x1x8x32xf32>
    tpu.vector_store %arg6[%c0_85, %299, %c0_86, %c0_87], %302 {strides = array<i32>} : memref<1x8x8x32xf32, #tpu.memory_space<vmem>>, vector<1x1x8x32xf32>,
    %303 = vector.shape_cast %294 : vector<8x1xi1> to vector<8x1xi1>
    %304 = vector.broadcast %303 : vector<8x1xi1> to vector<8x32xi1>
    %305 = arith.select %304, %292, %256 : vector<8x32xi1>, vector<8x32xf32>
    %306 = vector.shape_cast %294 : vector<8x1xi1> to vector<8x1xi1>
    %307 = vector.broadcast %306 : vector<8x1xi1> to vector<8x32xi1>
    %308 = arith.select %307, %290, %259 : vector<8x32xi1>, vector<8x32xf32>
    %c6_i32 = arith.constant 6 : i32
    %c0_i32_88 = arith.constant 0 : i32
    %309 = arith.cmpi eq, %arg0, %c0_i32_88 : i32
    %c7_i32_89 = arith.constant 7 : i32
    %310 = arith.subi %c7_i32_89, %c6_i32 : i32
    %311 = arith.select %309, %c6_i32, %310 : i32
    %312 = arith.index_cast %311 : i32 to index
    %c0_90 = arith.constant 0 : index
    %c0_91 = arith.constant 0 : index
    %313 = vector.load %arg9[%312, %c0_90, %c0_91] : memref<8x8x128xf32, #tpu.memory_space<vmem>>, vector<1x8x128xf32>
    %314 = vector.shape_cast %313 : vector<1x8x128xf32> to vector<8x128xf32>
    %cst_92 = arith.constant dense<0.000000e+00> : vector<8x128xf32>
    %315 = tpu.matmul %305, %13, %cst_92 {dimension_numbers = #tpu.dot_dimension_numbers<[1], [0], [0], [1], [0, 0, 1, 1], [], []>} : vector<8x32xf32>, vector<32x128xf32>, vector<8x128xf32> -> vector<8x128xf32>
    %316 = arith.addf %314, %315 : vector<8x128xf32>
    %317 = vector.extract_strided_slice %316 {offsets = [0, 0], sizes = [8, 32], strides = [1, 1]} : vector<8x128xf32> to vector<8x32xf32>
    %318 = arith.negf %317 : vector<8x32xf32>
    %319 = math.exp %318 : vector<8x32xf32>
    %cst_93 = arith.constant 1.000000e+00 : f32
    %320 = vector.broadcast %cst_93 : f32 to vector<8x32xf32>
    %321 = arith.addf %320, %319 : vector<8x32xf32>
    %322 = arith.divf %320, %321 : vector<8x32xf32>
    %323 = vector.extract_strided_slice %316 {offsets = [0, 32], sizes = [8, 32], strides = [1, 1]} : vector<8x128xf32> to vector<8x32xf32>
    %324 = arith.negf %323 : vector<8x32xf32>
    %325 = math.exp %324 : vector<8x32xf32>
    %cst_94 = arith.constant 1.000000e+00 : f32
    %326 = vector.broadcast %cst_94 : f32 to vector<8x32xf32>
    %327 = arith.addf %326, %325 : vector<8x32xf32>
    %328 = arith.divf %326, %327 : vector<8x32xf32>
    %329 = vector.extract_strided_slice %316 {offsets = [0, 64], sizes = [8, 32], strides = [1, 1]} : vector<8x128xf32> to vector<8x32xf32>
    %330 = math.tanh %329 : vector<8x32xf32>
    %331 = vector.extract_strided_slice %316 {offsets = [0, 96], sizes = [8, 32], strides = [1, 1]} : vector<8x128xf32> to vector<8x32xf32>
    %332 = arith.negf %331 : vector<8x32xf32>
    %333 = math.exp %332 : vector<8x32xf32>
    %cst_95 = arith.constant 1.000000e+00 : f32
    %334 = vector.broadcast %cst_95 : f32 to vector<8x32xf32>
    %335 = arith.addf %334, %333 : vector<8x32xf32>
    %336 = arith.divf %334, %335 : vector<8x32xf32>
    %337 = arith.mulf %328, %308 : vector<8x32xf32>
    %338 = arith.mulf %322, %330 : vector<8x32xf32>
    %339 = arith.addf %337, %338 : vector<8x32xf32>
    %340 = math.tanh %339 : vector<8x32xf32>
    %341 = arith.mulf %336, %340 : vector<8x32xf32>
    %342 = vector.broadcast %311 : i32 to vector<8x1xi32>
    %343 = arith.cmpi slt, %342, %11 : vector<8x1xi32>
    %cst_96 = arith.constant 0.000000e+00 : f32
    %344 = vector.shape_cast %343 : vector<8x1xi1> to vector<8x1xi1>
    %345 = vector.broadcast %344 : vector<8x1xi1> to vector<8x32xi1>
    %346 = vector.broadcast %cst_96 : f32 to vector<8x32xf32>
    %347 = arith.select %345, %341, %346 : vector<8x32xi1>, vector<8x32xf32>
    %c0_97 = arith.constant 0 : index
    %348 = arith.index_cast %311 : i32 to index
    %c0_98 = arith.constant 0 : index
    %c0_99 = arith.constant 0 : index
    %349 = vector.load %arg6[%c0_97, %348, %c0_98, %c0_99] : memref<1x8x8x32xf32, #tpu.memory_space<vmem>>, vector<1x1x8x32xf32>
    %350 = vector.shape_cast %349 : vector<1x1x8x32xf32> to vector<8x32xf32>
    %351 = vector.shape_cast %347 : vector<8x32xf32> to vector<1x1x8x32xf32>
    tpu.vector_store %arg6[%c0_97, %348, %c0_98, %c0_99], %351 {strides = array<i32>} : memref<1x8x8x32xf32, #tpu.memory_space<vmem>>, vector<1x1x8x32xf32>,
    %352 = vector.shape_cast %343 : vector<8x1xi1> to vector<8x1xi1>
    %353 = vector.broadcast %352 : vector<8x1xi1> to vector<8x32xi1>
    %354 = arith.select %353, %341, %305 : vector<8x32xi1>, vector<8x32xf32>
    %355 = vector.shape_cast %343 : vector<8x1xi1> to vector<8x1xi1>
    %356 = vector.broadcast %355 : vector<8x1xi1> to vector<8x32xi1>
    %357 = arith.select %356, %339, %308 : vector<8x32xi1>, vector<8x32xf32>
    %c7_i32_100 = arith.constant 7 : i32
    %c0_i32_101 = arith.constant 0 : i32
    %358 = arith.cmpi eq, %arg0, %c0_i32_101 : i32
    %c7_i32_102 = arith.constant 7 : i32
    %359 = arith.subi %c7_i32_102, %c7_i32_100 : i32
    %360 = arith.select %358, %c7_i32_100, %359 : i32
    %361 = arith.index_cast %360 : i32 to index
    %c0_103 = arith.constant 0 : index
    %c0_104 = arith.constant 0 : index
    %362 = vector.load %arg9[%361, %c0_103, %c0_104] : memref<8x8x128xf32, #tpu.memory_space<vmem>>, vector<1x8x128xf32>
    %363 = vector.shape_cast %362 : vector<1x8x128xf32> to vector<8x128xf32>
    %cst_105 = arith.constant dense<0.000000e+00> : vector<8x128xf32>
    %364 = tpu.matmul %354, %13, %cst_105 {dimension_numbers = #tpu.dot_dimension_numbers<[1], [0], [0], [1], [0, 0, 1, 1], [], []>} : vector<8x32xf32>, vector<32x128xf32>, vector<8x128xf32> -> vector<8x128xf32>
    %365 = arith.addf %363, %364 : vector<8x128xf32>
    %366 = vector.extract_strided_slice %365 {offsets = [0, 0], sizes = [8, 32], strides = [1, 1]} : vector<8x128xf32> to vector<8x32xf32>
    %367 = arith.negf %366 : vector<8x32xf32>
    %368 = math.exp %367 : vector<8x32xf32>
    %cst_106 = arith.constant 1.000000e+00 : f32
    %369 = vector.broadcast %cst_106 : f32 to vector<8x32xf32>
    %370 = arith.addf %369, %368 : vector<8x32xf32>
    %371 = arith.divf %369, %370 : vector<8x32xf32>
    %372 = vector.extract_strided_slice %365 {offsets = [0, 32], sizes = [8, 32], strides = [1, 1]} : vector<8x128xf32> to vector<8x32xf32>
    %373 = arith.negf %372 : vector<8x32xf32>
    %374 = math.exp %373 : vector<8x32xf32>
    %cst_107 = arith.constant 1.000000e+00 : f32
    %375 = vector.broadcast %cst_107 : f32 to vector<8x32xf32>
    %376 = arith.addf %375, %374 : vector<8x32xf32>
    %377 = arith.divf %375, %376 : vector<8x32xf32>
    %378 = vector.extract_strided_slice %365 {offsets = [0, 64], sizes = [8, 32], strides = [1, 1]} : vector<8x128xf32> to vector<8x32xf32>
    %379 = math.tanh %378 : vector<8x32xf32>
    %380 = vector.extract_strided_slice %365 {offsets = [0, 96], sizes = [8, 32], strides = [1, 1]} : vector<8x128xf32> to vector<8x32xf32>
    %381 = arith.negf %380 : vector<8x32xf32>
    %382 = math.exp %381 : vector<8x32xf32>
    %cst_108 = arith.constant 1.000000e+00 : f32
    %383 = vector.broadcast %cst_108 : f32 to vector<8x32xf32>
    %384 = arith.addf %383, %382 : vector<8x32xf32>
    %385 = arith.divf %383, %384 : vector<8x32xf32>
    %386 = arith.mulf %377, %357 : vector<8x32xf32>
    %387 = arith.mulf %371, %379 : vector<8x32xf32>
    %388 = arith.addf %386, %387 : vector<8x32xf32>
    %389 = math.tanh %388 : vector<8x32xf32>
    %390 = arith.mulf %385, %389 : vector<8x32xf32>
    %391 = vector.broadcast %360 : i32 to vector<8x1xi32>
    %392 = arith.cmpi slt, %391, %11 : vector<8x1xi32>
    %cst_109 = arith.constant 0.000000e+00 : f32
    %393 = vector.shape_cast %392 : vector<8x1xi1> to vector<8x1xi1>
    %394 = vector.broadcast %393 : vector<8x1xi1> to vector<8x32xi1>
    %395 = vector.broadcast %cst_109 : f32 to vector<8x32xf32>
    %396 = arith.select %394, %390, %395 : vector<8x32xi1>, vector<8x32xf32>
    %c0_110 = arith.constant 0 : index
    %397 = arith.index_cast %360 : i32 to index
    %c0_111 = arith.constant 0 : index
    %c0_112 = arith.constant 0 : index
    %398 = vector.load %arg6[%c0_110, %397, %c0_111, %c0_112] : memref<1x8x8x32xf32, #tpu.memory_space<vmem>>, vector<1x1x8x32xf32>
    %399 = vector.shape_cast %398 : vector<1x1x8x32xf32> to vector<8x32xf32>
    %400 = vector.shape_cast %396 : vector<8x32xf32> to vector<1x1x8x32xf32>
    tpu.vector_store %arg6[%c0_110, %397, %c0_111, %c0_112], %400 {strides = array<i32>} : memref<1x8x8x32xf32, #tpu.memory_space<vmem>>, vector<1x1x8x32xf32>,
    %401 = vector.shape_cast %392 : vector<8x1xi1> to vector<8x1xi1>
    %402 = vector.broadcast %401 : vector<8x1xi1> to vector<8x32xi1>
    %403 = arith.select %402, %390, %354 : vector<8x32xi1>, vector<8x32xf32>
    %404 = vector.shape_cast %392 : vector<8x1xi1> to vector<8x1xi1>
    %405 = vector.broadcast %404 : vector<8x1xi1> to vector<8x32xi1>
    %406 = arith.select %405, %388, %357 : vector<8x32xi1>, vector<8x32xf32>
    %c8_i32 = arith.constant 8 : i32
    %c0_113 = arith.constant 0 : index
    %c0_114 = arith.constant 0 : index
    %c0_115 = arith.constant 0 : index
    %407 = vector.load %arg7[%c0_113, %c0_114, %c0_115] : memref<1x8x32xf32, #tpu.memory_space<vmem>>, vector<1x8x32xf32>
    %408 = vector.shape_cast %407 : vector<1x8x32xf32> to vector<8x32xf32>
    %409 = vector.shape_cast %403 : vector<8x32xf32> to vector<1x8x32xf32>
    tpu.vector_store %arg7[%c0_113, %c0_114, %c0_115], %409 {strides = array<i32>} : memref<1x8x32xf32, #tpu.memory_space<vmem>>, vector<1x8x32xf32>,
    %c0_116 = arith.constant 0 : index
    %c0_117 = arith.constant 0 : index
    %c0_118 = arith.constant 0 : index
    %410 = vector.load %arg8[%c0_116, %c0_117, %c0_118] : memref<1x8x32xf32, #tpu.memory_space<vmem>>, vector<1x8x32xf32>
    %411 = vector.shape_cast %410 : vector<1x8x32xf32> to vector<8x32xf32>
    %412 = vector.shape_cast %406 : vector<8x32xf32> to vector<1x8x32xf32>
    tpu.vector_store %arg8[%c0_116, %c0_117, %c0_118], %412 {strides = array<i32>} : memref<1x8x32xf32, #tpu.memory_space<vmem>>, vector<1x8x32xf32>,
    return
  }
  func.func @transform_0(%arg0: i32) -> (i32, i32, i32) {
    %c0_i32 = arith.constant 0 : i32
    %c0_i32_0 = arith.constant 0 : i32
    %c0_i32_1 = arith.constant 0 : i32
    %c0_i32_2 = arith.constant 0 : i32
    return %c0_i32, %c0_i32_0, %c0_i32_1 : i32, i32, i32
  }
  func.func @transform_1(%arg0: i32) -> (i32, i32) {
    %c0_i32 = arith.constant 0 : i32
    %c0_i32_0 = arith.constant 0 : i32
    %c0_i32_1 = arith.constant 0 : i32
    return %c0_i32, %c0_i32_0 : i32, i32
  }
  func.func @transform_2(%arg0: i32) -> (i32, i32, i32) {
    %c0_i32 = arith.constant 0 : i32
    %c0_i32_0 = arith.constant 0 : i32
    %c0_i32_1 = arith.constant 0 : i32
    return %arg0, %c0_i32, %c0_i32_0 : i32, i32, i32
  }
  func.func @transform_3(%arg0: i32) -> (i32, i32, i32) {
    %c0_i32 = arith.constant 0 : i32
    %c0_i32_0 = arith.constant 0 : i32
    %c0_i32_1 = arith.constant 0 : i32
    return %arg0, %c0_i32, %c0_i32_0 : i32, i32, i32
  }
  func.func @transform_4(%arg0: i32) -> (i32, i32, i32) {
    %c0_i32 = arith.constant 0 : i32
    %c0_i32_0 = arith.constant 0 : i32
    %c0_i32_1 = arith.constant 0 : i32
    return %arg0, %c0_i32, %c0_i32_0 : i32, i32, i32
  }
  func.func @transform_5(%arg0: i32) -> (i32, i32, i32, i32) {
    %c0_i32 = arith.constant 0 : i32
    %c0_i32_0 = arith.constant 0 : i32
    %c0_i32_1 = arith.constant 0 : i32
    %c0_i32_2 = arith.constant 0 : i32
    return %arg0, %c0_i32, %c0_i32_0, %c0_i32_1 : i32, i32, i32, i32
  }
  func.func @transform_6(%arg0: i32) -> (i32, i32, i32) {
    %c0_i32 = arith.constant 0 : i32
    %c0_i32_0 = arith.constant 0 : i32
    %c0_i32_1 = arith.constant 0 : i32
    return %arg0, %c0_i32, %c0_i32_0 : i32, i32, i32
  }
  func.func @transform_7(%arg0: i32) -> (i32, i32, i32) {
    %c0_i32 = arith.constant 0 : i32
    %c0_i32_0 = arith.constant 0 : i32
    %c0_i32_1 = arith.constant 0 : i32
    return %arg0, %c0_i32, %c0_i32_0 : i32, i32, i32
  }
}

</mosaic_0001>

<bundles_post_ra>
// kernel: encoder_forward.1
= control target key start
LH: loop header
LB: loop body
LE: loop exit
PB: predicated region body
PF: predicated region fallthrough
CT: control target
= control target key end

     0   :  { %s1463_s24 = smov 0   ;;  %s1841_s0 = inlined_call_operand.vmem [shape: f32[8,8,32], index: 0, kind: input, shape index: {}]   ;;  %s1842_s1 = inlined_call_operand.vmem [shape: s32[8,1], index: 1, kind: input, shape index: {}]   ;;  %s1843_s2 = inlined_call_operand.vmem [shape: f32[2,32,128], index: 2, kind: input, shape index: {}]   ;;  %s1844_s3 = inlined_call_operand.vmem [shape: f32[2,32,128], index: 3, kind: input, shape index: {}]   ;;  %s1845_s4 = inlined_call_operand.vmem [shape: f32[2,1,128], index: 4, kind: input, shape index: {}]   ;;  %s1846_s5 = inlined_call_operand.vmem [shape: f32[2,8,8,32], index: 5, kind: output, shape index: {0}]   ;;  %s1847_s6 = inlined_call_operand.vmem [shape: f32[2,8,32], index: 6, kind: output, shape index: {1}]   ;;  %s1848_s7 = inlined_call_operand.vmem [shape: f32[2,8,32], index: 7, kind: output, shape index: {2}]  }
   0x1 LB: > { %s1469_s25 = sadd.s32 4294967295, %s1416_s24   ;;  %p1272_p0 = scmp.ge.s32.totalorder %s1416_s24, 1  ;;  %s1416_s24 = sphi %s1463_s24, %s18_s24  }
   0x2   : > { %p260_p1 = scmp.lt.s32.totalorder %s1416_s24, 3 }
   0x4   : > { %p261_p2 = pnand %p1272_p0, %p260_p1 }
   0x5   : > { %p308_p3 = scmp.lt.s32.totalorder (!%p261_p2), %s1469_s25, 1  ;;  %p429_p4 = scmp.eq.s32.totalorder (!%p261_p2), %s1469_s25, 0 }
   0x6   : > { %264 = sbr.rel (%p261_p2) target bundleno = 4695 (0x1257), region = 40  ;;  %s1420_s14 = smov (!%p261_p2), 32  }
   0xb   : > { %s1475_s26 = scalar_select %p308_p3, %s1469_s25, 1  ;;  %v334_v4 = vld [vmem:[%s1841_s0] sm:$0xff]  ;;  %vm350_vm0 = vcmask 261120   ;;  %v340_v5 = vld [vmem:[%s1841_s0 + $0x30] sm:$0xff]  ;;  %v335_v10 = vld [vmem:[%s1841_s0 + $0x8] sm:$0xff]  ;;  %v1418_v13 = vmov 0.0  }
   0xc   : > { %v338_v6 = vld [vmem:[%s1841_s0 + $0x20] sm:$0xff]  ;;  %v341_v11 = vld [vmem:[%s1841_s0 + $0x38] sm:$0xff]  ;;  %v336_v14 = vld [vmem:[%s1841_s0 + $0x10] sm:$0xff]  ;;  %v1421_v50 = vmov 0   ;;  %s1640_s8 = scalar_select %p429_p4, 2, 5 }
   0xd   : > { %s1314_s27 = sshll.u32 %s1475_s26, 5  ;;  %s320_s30 = scalar_lea.vmem %s1845_s4, %s1475_s26  ;;  %v337_v15 = vld [vmem:[%s1841_s0 + $0x18] sm:$0xff]  ;;  %1342 = vset.pattern.permute.xlu1 %v1421_v50  ;;  %1343 = vset.pattern.permute.xlu2 %v1421_v50  ;;  %v1581_v55 = vld [vmem:[%s1842_s1] sm:$0xff]  ;;  %v339_v58 = vld [vmem:[%s1841_s0 + $0x28] sm:$0xff] }
   0xe   : > { %s312_s10 = scalar_lea.vmem %s1843_s2, %s1314_s27  ;;  %s317_s13 = scalar_lea.vmem %s1844_s3, %s1314_s27  ;;  %v1553_v16 = vld [vmem:[%s320_s30] ss:$0 sm:$0xff]  ;;  %1344 = vset.pattern.permute.xlu0 %v1421_v50 }
   0xf   : > { %v345_v0 = vld [vmem:[%s312_s10 + $0x18] sm:$0xff]  ;;  %v344_v1 = vld [vmem:[%s312_s10 + $0x10] sm:$0xff]  ;;  %v343_v2 = vld [vmem:[%s312_s10 + $0x8] sm:$0xff]  ;;  %s1562_s30 = scalar_select %p429_p4, 0, 7 }
  0x10   : > { %387 = vmatpush.msra.mxu0 %v345_v0  ;;  %1319 = vmatpush.msra.mxu3 %v345_v0  ;;  %v342_v3 = vld [vmem:[%s312_s10] sm:$0xff]  ;;  %v1497_v7 = vld [vmem:[%s317_s13 + $0x18] sm:$0xff]  ;;  %v1501_v8 = vld [vmem:[%s317_s13 + $0x10] sm:$0xff]  ;;  %s1316_s19 = sshll.u32 %s1475_s26, 6  ;;  %s1294_s9 = sshll.u32 %s1640_s8, 3 }
  0x11   : > { %1317 = vmatpush.msra.mxu1 %v345_v0  ;;  %1318 = vmatpush.msra.mxu2 %v345_v0  ;;  %v1507_v9 = vld [vmem:[%s317_s13 + $0x8] sm:$0xff]  ;;  %v1518_v12 = vld [vmem:[%s317_s13] sm:$0xff]  ;;  %s1289_s11 = sshll.u32 %s1562_s30, 3  ;;  %s1419_s13 = smov 64   ;;  %v495_v56 = vstv %s1562_s30 }
  0x12   : > { %388 = vmatpush.msra.mxu0 %v344_v1  ;;  %1322 = vmatpush.msra.mxu3 %v344_v1  ;;  %s432_s12 = scalar_lea.vmem [#allocation2], %s1289_s11  ;;  %vm496_vm5 = vcmp.lt.s32.totalorder %v495_v56, %v1581_v55  ;;  %s1601_s22 = scalar_lea.vmem %s1846_s5, %s1316_s19 }
  0x13   : > { %1320 = vmatpush.msra.mxu1 %v344_v1  ;;  %1321 = vmatpush.msra.mxu2 %v344_v1  ;;  %v497_v57 = vsel %vm496_vm5, 1, %v1421_v50  ;;  %s507_s23 = scalar_lea.vmem %s1601_s22, %s1289_s11  ;;  %s592_s10 = scalar_lea.vmem [#allocation2], %s1294_s9 }
  0x14   : > { %389 = vmatpush.msra.mxu0 %v343_v2  ;;  %1325 = vmatpush.msra.mxu3 %v343_v2  ;;  %s1615_s27 = scalar_select %p429_p4, 1, 6 }
  0x15   : > { %1323 = vmatpush.msra.mxu1 %v343_v2  ;;  %1324 = vmatpush.msra.mxu2 %v343_v2  ;;  %s1665_s30 = scalar_select %p429_p4, 3, 4 }
  0x16   : > { %390 = vmatpush.msra.mxu0 %v342_v3  ;;  %1328 = vmatpush.msra.mxu3 %v342_v3  ;;  %s1291_s28 = sshll.u32 %s1615_s27, 3  ;;  %s1422_s25 = smov 96  }
  0x17   : > { %1281 = vmatmul.msk.f32.vlgmr.msra.gmra.mxu0 %vm350_vm0, %v334_v4  ;;  %1287 = vmatmul.msk.f32.vlgmr.msra.gmra.mxu3 %vm350_vm0, %v340_v5  ;;  %s512_s29 = scalar_lea.vmem [#allocation2], %s1291_s28  ;;  %s1297_s11 = sshll.u32 %s1665_s30, 3 }
  0x18   : > { %1326 = vmatpush.msra.mxu1 %v342_v3  ;;  %1327 = vmatpush.msra.mxu2 %v342_v3  ;;  %s1674_s15 = scalar_select %p429_p4, 4, 3 }
  0x19   : > { %1285 = vmatmul.msk.f32.vlgmr.msra.gmra.mxu1 %vm350_vm0, %v338_v6  ;;  %611 = vmatpush.msrb.mxu3 %v1497_v7  ;;  %s1715_s18 = scalar_select %p429_p4, 5, 2 }
  0x1a   : > { %528 = vmatpush.msrb.mxu2 %v1497_v7  ;;  %449 = vmatpush.msrb.mxu1 %v1497_v7  ;;  %s1300_s16 = sshll.u32 %s1674_s15, 3 }
  0x1b   : > { %612 = vmatpush.msrb.mxu3 %v1501_v8  ;;  %1286 = vmatmul.msk.f32.vlgmr.msra.gmra.mxu2 %vm350_vm0, %v339_v58  ;;  %s758_s17 = scalar_lea.vmem [#allocation2], %s1300_s16  ;;  %s1303_s19 = sshll.u32 %s1715_s18, 3 }
  0x1c   : > { %529 = vmatpush.msrb.mxu2 %v1501_v8  ;;  %450 = vmatpush.msrb.mxu1 %v1501_v8  ;;  %s841_s20 = scalar_lea.vmem [#allocation2], %s1303_s19 }
  0x1d   : > { %613 = vmatpush.msrb.mxu3 %v1507_v9  ;;  %s1740_s21 = scalar_select %p429_p4, 6, 1 }
  0x1e   : > { %530 = vmatpush.msrb.mxu2 %v1507_v9  ;;  %451 = vmatpush.msrb.mxu1 %v1507_v9 }
  0x1f   : > { %1282 = vmatmul.msk.f32.gmra.mxu0 %vm350_vm0, %v335_v10  ;;  %1288 = vmatmul.msk.f32.gmra.mxu3 %vm350_vm0, %v341_v11 }
  0x20   : > { %452 = vmatpush.msrb.mxu1 %v1518_v12  ;;  %531 = vmatpush.msrb.mxu2 %v1518_v12 }
  0x21   : > { %453 = vmatmul.f32.vlgmr.msrb.gmra.mxu1 %v1418_v13  ;;  %614 = vmatpush.msrb.mxu3 %v1518_v12 }
  0x22   : > { %694 = vmatpush.msra.mxu1 %v1497_v7  ;;  %777 = vmatpush.msra.mxu2 %v1497_v7 }
  0x23   : > { %860 = vmatpush.msra.mxu3 %v1497_v7 }
  0x24   : > { %695 = vmatpush.msra.mxu1 %v1501_v8  ;;  %778 = vmatpush.msra.mxu2 %v1501_v8 }
  0x25   : > { %861 = vmatpush.msra.mxu3 %v1501_v8 }
  0x26   : > { %696 = vmatpush.msra.mxu1 %v1507_v9  ;;  %779 = vmatpush.msra.mxu2 %v1507_v9 }
  0x27   : > { %862 = vmatpush.msra.mxu3 %v1507_v9  ;;  %1283 = vmatmul.msk.f32.gmra.mxu0 %vm350_vm0, %v336_v14 }
  0x28   : > { %697 = vmatpush.msra.mxu1 %v1518_v12  ;;  %780 = vmatpush.msra.mxu2 %v1518_v12 }
  0x29   : > { %863 = vmatpush.msra.mxu3 %v1518_v12 }
  0x2a   : > { %943 = vmatpush.msrb.mxu1 %v1497_v7 }
  0x2c   : > { %944 = vmatpush.msrb.mxu1 %v1501_v8 }
  0x2e   : > { %945 = vmatpush.msrb.mxu1 %v1507_v9 }
  0x2f   : > { %1284 = vmatmul.msk.f32.gmra.mxu0 %vm350_vm0, %v337_v15 }
  0x30   : > { %946 = vmatpush.msrb.mxu1 %v1518_v12 }
  0x94   : > { %v392_v17 = vpop.f32.mrf.mxu0 }
  0x95   : > { %v393_v18 = vadd.f32 %v1553_v16, %v392_v17 }
  0x96   : > { %v404_v19 = vpop.f32.mrf.mxu1 }
  0x97   : > { %416 = vst [vmem:[#allocation2] sm:$0xff] %v393_v18  ;;  %v405_v20 = vadd.f32 %v1553_v16, %v404_v19 }
  0x99   : > { %420 = vst [vmem:[#allocation2 + $0x20] sm:$0xff] %v405_v20 }
  0x9a   : > { %v410_v21 = vpop.f32.mrf.mxu3 }
  0x9b   : > { %v411_v22 = vadd.f32 %v1553_v16, %v410_v21 }
  0x9c   : > { %v395_v23 = vpop.f32.mrf.mxu0 }
  0x9d   : > { %422 = vst [vmem:[#allocation2 + $0x30] sm:$0xff] %v411_v22  ;;  %v396_v24 = vadd.f32 %v1553_v16, %v395_v23 }
  0x9e   : > { %v454_v29 = vpop.f32.mrf.mxu1  ;;  %v407_v0 = vpop.f32.mrf.mxu2 }
  0x9f   : > { %417 = vst [vmem:[#allocation2 + $0x8] sm:$0xff] %v396_v24  ;;  %v408_v1 = vadd.f32 %v1553_v16, %v407_v0 }
  0xa2   : > { %v413_v25 = vpop.f32.mrf.mxu3 }
  0xa3   : > { %v414_v26 = vadd.f32 %v1553_v16, %v413_v25 }
  0xa4   : > { %v398_v27 = vpop.f32.mrf.mxu0 }
  0xa5   : > { %423 = vst [vmem:[#allocation2 + $0x38] sm:$0xff] %v414_v26  ;;  %v399_v28 = vadd.f32 %v1553_v16, %v398_v27 }
  0xa7   : > { %418 = vst [vmem:[#allocation2 + $0x10] sm:$0xff] %v399_v28 }
  0xac   : > { %v401_v30 = vpop.f32.mrf.mxu0 }
  0xad   : > { %v402_v32 = vadd.f32 %v1553_v16, %v401_v30 }
  0xae   : > { %v433_v31 = vld [vmem:[%s432_s12] sm:$0xff]  ;;  %s675_s12 = scalar_lea.vmem [#allocation2], %s1297_s11 }
  0xaf   : > { %v457_v33 = vadd.f32 %v454_v29, %v433_v31  ;;  %419 = vst [vmem:[#allocation2 + $0x18] sm:$0xff] %v402_v32 }
  0xb0   : > { %421 = vst [vmem:[#allocation2 + $0x28] sm:$0xff] %v408_v1 }
  0xb1   : > { %1346 = vtanh.f32 %v457_v33  ;;  %v1290_v35 = vmul.f32 -1.442695, %v457_v33 }
  0xb3   : > { %1348 = vpow2.f32 %v1290_v35 }
  0xb7   : > { %v1347_v34 = vpop.eup %1346  ;;  %v513_v2 = vld [vmem:[%s512_s29] sm:$0xff] }
  0xb8   : > { %480 = vrot.lane.b32.xlu0 %v1347_v34, %s1419_s13  ;;  %v593_v33 = vld [vmem:[%s592_s10] sm:$0xff]  ;;  %s1761_s10 = scalar_select %p429_p4, 7, 0 }
  0xb9   : > { %v1349_v36 = vpop.eup %1348 }
  0xba   : > { %v461_v37 = vadd.f32 1.0, %v1349_v36 }
  0xbc   : > { %1350 = vrcp.f32 %v461_v37  ;;  %v473_v43 = vand.u32 2147483648, %v461_v37  ;;  %vm467_vm2 = vweird.f32 %v461_v37  ;;  %v471_v44 = vand.u32 2147483647, %v461_v37 }
  0xbe   : > { %v474_v46 = vor.u32 1.1754944e-38, %v473_v43  ;;  %vm472_vm4 = vcmp.eq.f32.partialorder %v471_v44, 8.507059e+37 }
  0xc2   : > { %v1351_v38 = vpop.eup %1350 }
  0xc3   : > { %v463_v39 = vmul.f32 %v1351_v38, %v461_v37  ;;  %vm468_vm1 = vweird.f32 %v1351_v38  ;;  %v657_v37 = vstv %s1640_s8 }
  0xc4   : > { %vm469_vm3 = vmor %vm467_vm2, %vm468_vm1  ;;  %vm658_vm13 = vcmp.lt.s32.totalorder %v657_v37, %v1581_v55  ;;  %v759_v37 = vld [vmem:[%s758_s17] sm:$0xff] }
  0xc5   : > { %v464_v40 = vsub.f32 1.0, %v463_v39 }
  0xc7   : > { %v465_v41 = vmul.f32 %v1351_v38, %v464_v40 }
  0xc9   : > { %v466_v42 = vadd.f32 %v1351_v38, %v465_v41 }
  0xcb   : > { %v470_v45 = vsel %vm469_vm3, %v1351_v38, %v466_v42  ;;  %v659_v38 = vsel %vm658_vm13, 1, %v1421_v50 }
  0xcc   : > { %v475_v48 = vsel %vm472_vm4, %v474_v46, %v470_v45 }
  0xcd   : > { %v478_v51 = vmul.f32 0.0, %v475_v48 }
 0x12a   : > { %v481_v47 = vpop.permute.xlu0 %480 }
 0x12b   : > { %v483_v49 = vmul.f32 %v481_v47, %v475_v48 }
 0x12d   : > { %485 = vrot.lane.b32.xlu0 %v483_v49, %s1420_s14 }
 0x19f   : > { %v486_v52 = vpop.permute.xlu0 %485 }
 0x1a0   : > { %v1575_v53 = vadd.f32 %v486_v52, %v478_v51 }
 0x1a2   : > { %1352 = vtanh.f32 %v1575_v53 }
 0x1a8   : > { %v1353_v54 = vpop.eup %1352 }
 0x1a9   : > { %491 = vrot.lane.b32.xlu1 %v1353_v54, %s1419_s13 }
 0x1b1   : > { %499 = vperm.xlu1 %1342, %v497_v57  }
 0x21b   : > { %v492_v59 = vpop.permute.xlu1 %491 }
 0x21c   : > { %v494_v60 = vmul.f32 %v492_v59, %v475_v48 }
 0x223   : > { %v500_v61 = vpop.permute.xlu1 %499 }
 0x224   : > { %vm501_vm6 = vcmp.eq.s32.totalorder %v500_v61, 1 }
 0x225   : > { %v502_v62 = vsel %vm501_vm6, %v494_v60, 0.0  ;;  %v509_v23 = vsel %vm501_vm6, %v1575_v53, 0.0 }
 0x226   : > { %504 = vrot.lane.b32.xlu2 %v502_v62, %s1420_s14 }
 0x280   : > { %v505_v63 = vpop.permute.xlu2 %504 }
 0x281   : > { %508 = vst.msk [vmem:[%s507_s23] sm:$0xff] %vm350_vm0, %v505_v63  ;;  %1292 = vmatmul.msk.f32.vlgmr.msrb.gmra.mxu2 %vm350_vm0, %v505_v63  ;;  %s1306_s23 = sshll.u32 %s1740_s21, 3 }
 0x282   : > { %1026 = vmatpush.msrb.mxu2 %v1497_v7  ;;  %s924_s29 = scalar_lea.vmem [#allocation2], %s1306_s23  ;;  %s1001_s8 = scalar_lea.vmem %s1601_s22, %s1306_s23 }
 0x284   : > { %1027 = vmatpush.msrb.mxu2 %v1501_v8 }
 0x286   : > { %1028 = vmatpush.msrb.mxu2 %v1507_v9  ;;  %v574_v9 = vstv %s1615_s27  ;;  %s752_s27 = scalar_lea.vmem %s1601_s22, %s1297_s11 }
 0x287   : > { %vm575_vm7 = vcmp.lt.s32.totalorder %v574_v9, %v1581_v55  ;;  %v740_v9 = vstv %s1665_s30 }
 0x288   : > { %1029 = vmatpush.msrb.mxu2 %v1518_v12  ;;  %v576_v10 = vsel %vm575_vm7, 1, %v1421_v50  ;;  %vm741_vm4 = vcmp.lt.s32.totalorder %v740_v9, %v1581_v55 }
 0x304   : > { %v533_v3 = vpop.f32.mrf.mxu2 }
 0x305   : > { %v536_v4 = vadd.f32 %v533_v3, %v513_v2  ;;  %v676_v2 = vld [vmem:[%s675_s12] sm:$0xff]  ;;  %s1309_s12 = sshll.u32 %s1761_s10, 3 }
 0x306   : > { %s1007_s17 = scalar_lea.vmem [#allocation2], %s1309_s12 }
 0x307   : > { %1354 = vtanh.f32 %v536_v4  ;;  %v1293_v6 = vmul.f32 -1.442695, %v536_v4 }
 0x309   : > { %1356 = vpow2.f32 %v1293_v6 }
 0x30d   : > { %v1355_v5 = vpop.eup %1354 }
 0x30e   : > { %559 = vrot.lane.b32.xlu2 %v1355_v5, %s1419_s13 }
 0x30f   : > { %v1357_v7 = vpop.eup %1356 }
 0x310   : > { %v540_v8 = vadd.f32 1.0, %v1357_v7 }
 0x312   : > { %1358 = vrcp.f32 %v540_v8  ;;  %v552_v16 = vand.u32 2147483648, %v540_v8  ;;  %vm546_vm9 = vweird.f32 %v540_v8  ;;  %v550_v17 = vand.u32 2147483647, %v540_v8 }
 0x314   : > { %v553_v19 = vor.u32 1.1754944e-38, %v552_v16  ;;  %vm551_vm11 = vcmp.eq.f32.partialorder %v550_v17, 8.507059e+37 }
 0x316   : > { %578 = vperm.xlu2 %1343, %v576_v10   ;;  %v742_v10 = vsel %vm741_vm4, 1, %v1421_v50 }
 0x318   : > { %v1359_v11 = vpop.eup %1358 }
 0x319   : > { %v542_v12 = vmul.f32 %v1359_v11, %v540_v8  ;;  %vm547_vm8 = vweird.f32 %v1359_v11 }
 0x31a   : > { %vm548_vm10 = vmor %vm546_vm9, %vm547_vm8 }
 0x31b   : > { %v543_v13 = vsub.f32 1.0, %v542_v12 }
 0x31d   : > { %v544_v14 = vmul.f32 %v1359_v11, %v543_v13 }
 0x31f   : > { %v545_v15 = vadd.f32 %v1359_v11, %v544_v14 }
 0x321   : > { %v549_v18 = vsel %vm548_vm10, %v1359_v11, %v545_v15  ;;  %v823_v11 = vstv %s1674_s15 }
 0x322   : > { %v554_v21 = vsel %vm551_vm11, %v553_v19, %v549_v18  ;;  %vm824_vm5 = vcmp.lt.s32.totalorder %v823_v11, %v1581_v55 }
 0x323   : > { %v557_v24 = vmul.f32 %v554_v21, %v509_v23  ;;  %v825_v12 = vsel %vm824_vm5, 1, %v1421_v50 }
 0x368   : > { %v560_v20 = vpop.permute.xlu2 %559 }
 0x369   : > { %v562_v22 = vmul.f32 %v560_v20, %v554_v21 }
 0x36b   : > { %564 = vrot.lane.b32.xlu0 %v562_v22, %s1420_s14 }
 0x370   : > { %v1628_v28 = vpop.permute.xlu2 %578 }
 0x371   : > { %vm580_vm12 = vcmp.eq.s32.totalorder %v1628_v28, 1 }
 0x3dd   : > { %v565_v25 = vpop.permute.xlu0 %564 }
 0x3de   : > { %v567_v26 = vadd.f32 %v565_v25, %v557_v24 }
 0x3e0   : > { %1360 = vtanh.f32 %v567_v26  ;;  %v589_v56 = vsel %vm580_vm12, %v567_v26, %v509_v23 }
 0x3e6   : > { %v1361_v27 = vpop.eup %1360 }
 0x3e7   : > { %570 = vrot.lane.b32.xlu1 %v1361_v27, %s1419_s13 }
 0x459   : > { %v571_v29 = vpop.permute.xlu1 %570 }
 0x45a   : > { %v1630_v30 = vmul.f32 %v571_v29, %v554_v21 }
 0x45c   : > { %v588_v31 = vsel %vm580_vm12, %v1630_v30, %v502_v62 }
 0x45d   : > { %595 = vrot.lane.b32.xlu0 %v588_v31, %s1420_s14 }
 0x4cf   : > { %v596_v32 = vpop.permute.xlu0 %595 }
 0x4d0   : > { %1295 = vmatmul.msk.f32.vlgmr.msrb.gmra.mxu3 %vm350_vm0, %v596_v32 }
 0x553   : > { %v616_v34 = vpop.f32.mrf.mxu3 }
 0x554   : > { %v619_v35 = vadd.f32 %v616_v34, %v593_v33 }
 0x556   : > { %1362 = vtanh.f32 %v619_v35  ;;  %v1296_v39 = vmul.f32 -1.442695, %v619_v35 }
 0x558   : > { %1364 = vpow2.f32 %v1296_v39 }
 0x55c   : > { %v1363_v36 = vpop.eup %1362 }
 0x55d   : > { %642 = vrot.lane.b32.xlu1 %v1363_v36, %s1419_s13 }
 0x55e   : > { %v1365_v40 = vpop.eup %1364 }
 0x55f   : > { %v623_v41 = vadd.f32 1.0, %v1365_v40 }
 0x561   : > { %1366 = vrcp.f32 %v623_v41  ;;  %v635_v47 = vand.u32 2147483648, %v623_v41  ;;  %vm629_vm15 = vweird.f32 %v623_v41  ;;  %v633_v48 = vand.u32 2147483647, %v623_v41 }
 0x563   : > { %v636_v51 = vor.u32 1.1754944e-38, %v635_v47  ;;  %vm634_vm2 = vcmp.eq.f32.partialorder %v633_v48, 8.507059e+37 }
 0x565   : > { %661 = vperm.xlu1 %1342, %v659_v38  }
 0x567   : > { %v1367_v42 = vpop.eup %1366 }
 0x568   : > { %v625_v43 = vmul.f32 %v1367_v42, %v623_v41  ;;  %vm630_vm14 = vweird.f32 %v1367_v42 }
 0x569   : > { %vm631_vm1 = vmor %vm629_vm15, %vm630_vm14 }
 0x56a   : > { %v626_v44 = vsub.f32 1.0, %v625_v43 }
 0x56c   : > { %v627_v45 = vmul.f32 %v1367_v42, %v626_v44 }
 0x56e   : > { %v628_v46 = vadd.f32 %v1367_v42, %v627_v45 }
 0x570   : > { %v632_v49 = vsel %vm631_vm1, %v1367_v42, %v628_v46 }
 0x571   : > { %v637_v53 = vsel %vm634_vm2, %v636_v51, %v632_v49 }
 0x572   : > { %v640_v57 = vmul.f32 %v637_v53, %v589_v56 }
 0x5cf   : > { %v643_v52 = vpop.permute.xlu1 %642 }
 0x5d0   : > { %v645_v54 = vmul.f32 %v643_v52, %v637_v53 }
 0x5d2   : > { %647 = vrot.lane.b32.xlu2 %v645_v54, %s1420_s14 }
 0x5d7   : > { %v1653_v61 = vpop.permute.xlu1 %661 }
 0x5d8   : > { %vm663_vm3 = vcmp.eq.s32.totalorder %v1653_v61, 1 }
 0x62c   : > { %v648_v58 = vpop.permute.xlu2 %647 }
 0x62d   : > { %v650_v59 = vadd.f32 %v648_v58, %v640_v57 }
 0x62f   : > { %1368 = vtanh.f32 %v650_v59  ;;  %v672_v25 = vsel %vm663_vm3, %v650_v59, %v589_v56 }
 0x635   : > { %v1369_v60 = vpop.eup %1368 }
 0x636   : > { %653 = vrot.lane.b32.xlu0 %v1369_v60, %s1419_s13 }
 0x6a8   : > { %v654_v62 = vpop.permute.xlu0 %653 }
 0x6a9   : > { %v1655_v63 = vmul.f32 %v654_v62, %v637_v53 }
 0x6ab   : > { %v671_v0 = vsel %vm663_vm3, %v1655_v63, %v588_v31 }
 0x6ac   : > { %678 = vrot.lane.b32.xlu2 %v671_v0, %s1420_s14 }
 0x706   : > { %v679_v1 = vpop.permute.xlu2 %678 }
 0x707   : > { %1298 = vmatmul.msk.f32.vlgmr.msra.gmra.mxu1 %vm350_vm0, %v679_v1 }
 0x784   : > { %v699_v3 = vpop.f32.mrf.mxu1 }
 0x785   : > { %v702_v4 = vadd.f32 %v699_v3, %v676_v2 }
 0x787   : > { %1370 = vtanh.f32 %v702_v4  ;;  %v1299_v6 = vmul.f32 -1.442695, %v702_v4 }
 0x789   : > { %1372 = vpow2.f32 %v1299_v6  ;;  %v842_v6 = vld [vmem:[%s841_s20] sm:$0xff]  ;;  %s586_s20 = scalar_lea.vmem %s1601_s22, %s1291_s28  ;;  %s835_s28 = scalar_lea.vmem %s1601_s22, %s1300_s16 }
 0x78d   : > { %v1371_v5 = vpop.eup %1370 }
 0x78e   : > { %725 = vrot.lane.b32.xlu0 %v1371_v5, %s1419_s13 }
 0x78f   : > { %v1373_v7 = vpop.eup %1372 }
 0x790   : > { %v706_v8 = vadd.f32 1.0, %v1373_v7 }
 0x792   : > { %1374 = vrcp.f32 %v706_v8  ;;  %v718_v18 = vand.u32 2147483648, %v706_v8  ;;  %vm712_vm7 = vweird.f32 %v706_v8  ;;  %v716_v19 = vand.u32 2147483647, %v706_v8 }
 0x794   : > { %v719_v21 = vor.u32 1.1754944e-38, %v718_v18  ;;  %vm717_vm9 = vcmp.eq.f32.partialorder %v716_v19, 8.507059e+37 }
 0x796   : > { %744 = vperm.xlu0 %1344, %v742_v10   ;;  %v906_v10 = vstv %s1715_s18  ;;  %s1084_s18 = scalar_lea.vmem %s1601_s22, %s1309_s12 }
 0x797   : > { %vm907_vm2 = vcmp.lt.s32.totalorder %v906_v10, %v1581_v55 }
 0x798   : > { %v1375_v13 = vpop.eup %1374  ;;  %v908_v11 = vsel %vm907_vm2, 1, %v1421_v50 }
 0x799   : > { %v708_v14 = vmul.f32 %v1375_v13, %v706_v8  ;;  %vm713_vm6 = vweird.f32 %v1375_v13 }
 0x79a   : > { %vm714_vm8 = vmor %vm712_vm7, %vm713_vm6 }
 0x79b   : > { %v709_v15 = vsub.f32 1.0, %v708_v14 }
 0x79d   : > { %v710_v16 = vmul.f32 %v1375_v13, %v709_v15 }
 0x79e   : > { %827 = vperm.xlu0 %1344, %v825_v12  }
 0x79f   : > { %v711_v17 = vadd.f32 %v1375_v13, %v710_v16 }
 0x7a1   : > { %v715_v20 = vsel %vm714_vm8, %v1375_v13, %v711_v17 }
 0x7a2   : > { %v720_v23 = vsel %vm717_vm9, %v719_v21, %v715_v20 }
 0x7a3   : > { %v723_v26 = vmul.f32 %v720_v23, %v672_v25 }
 0x800   : > { %v726_v22 = vpop.permute.xlu0 %725 }
 0x801   : > { %v728_v24 = vmul.f32 %v726_v22, %v720_v23 }
 0x803   : > { %730 = vrot.lane.b32.xlu1 %v728_v24, %s1420_s14 }
 0x808   : > { %v1685_v32 = vpop.permute.xlu0 %744 }
 0x809   : > { %vm746_vm10 = vcmp.eq.s32.totalorder %v1685_v32, 1 }
 0x810   : > { %v1703_v1 = vpop.permute.xlu0 %827 }
 0x811   : > { %vm829_vm1 = vcmp.eq.s32.totalorder %v1703_v1, 1  ;;  %v664_v1 = vsel %vm663_vm3, %v1655_v63, 0.0 }
 0x875   : > { %v731_v27 = vpop.permute.xlu1 %730 }
 0x876   : > { %v733_v29 = vadd.f32 %v731_v27, %v723_v26 }
 0x878   : > { %1376 = vtanh.f32 %v733_v29  ;;  %v755_v58 = vsel %vm746_vm10, %v733_v29, %v672_v25 }
 0x87e   : > { %v1377_v31 = vpop.eup %1376 }
 0x87f   : > { %736 = vrot.lane.b32.xlu2 %v1377_v31, %s1419_s13 }
 0x8d9   : > { %v737_v33 = vpop.permute.xlu2 %736 }
 0x8da   : > { %v1687_v34 = vmul.f32 %v737_v33, %v720_v23 }
 0x8dc   : > { %v754_v35 = vsel %vm746_vm10, %v1687_v34, %v671_v0 }
 0x8dd   : > { %761 = vrot.lane.b32.xlu1 %v754_v35, %s1420_s14 }
 0x94f   : > { %v762_v36 = vpop.permute.xlu1 %761 }
 0x950   : > { %1301 = vmatmul.msk.f32.vlgmr.msra.gmra.mxu2 %vm350_vm0, %v762_v36 }
 0x9d3   : > { %v782_v38 = vpop.f32.mrf.mxu2 }
 0x9d4   : > { %v785_v39 = vadd.f32 %v782_v38, %v759_v37 }
 0x9d6   : > { %1378 = vtanh.f32 %v785_v39  ;;  %v1302_v41 = vmul.f32 -1.442695, %v785_v39 }
 0x9d8   : > { %1380 = vpow2.f32 %v1302_v41  ;;  %v925_v41 = vld [vmem:[%s924_s29] sm:$0xff]  ;;  %s1279_s29 = sshll.u32 %s1475_s26, 3 }
 0x9d9   : > { %s333_s11 = scalar_lea.vmem %s1848_s7, %s1279_s29  ;;  %s329_s26 = scalar_lea.vmem %s1847_s6, %s1279_s29 }
 0x9dc   : > { %v1379_v40 = vpop.eup %1378 }
 0x9dd   : > { %808 = vrot.lane.b32.xlu2 %v1379_v40, %s1419_s13 }
 0x9de   : > { %v1381_v42 = vpop.eup %1380 }
 0x9df   : > { %v789_v43 = vadd.f32 1.0, %v1381_v42 }
 0x9e1   : > { %1382 = vrcp.f32 %v789_v43  ;;  %v801_v49 = vand.u32 2147483648, %v789_v43  ;;  %vm795_vm13 = vweird.f32 %v789_v43  ;;  %v799_v51 = vand.u32 2147483647, %v789_v43 }
 0x9e3   : > { %v802_v53 = vor.u32 1.1754944e-38, %v801_v49  ;;  %vm800_vm15 = vcmp.eq.f32.partialorder %v799_v51, 8.507059e+37 }
 0x9e7   : > { %v1383_v44 = vpop.eup %1382 }
 0x9e8   : > { %v791_v45 = vmul.f32 %v1383_v44, %v789_v43  ;;  %vm796_vm11 = vweird.f32 %v1383_v44 }
 0x9e9   : > { %vm797_vm14 = vmor %vm795_vm13, %vm796_vm11 }
 0x9ea   : > { %v792_v46 = vsub.f32 1.0, %v791_v45  ;;  %v989_v45 = vstv %s1740_s21 }
 0x9eb   : > { %vm990_vm9 = vcmp.lt.s32.totalorder %v989_v45, %v1581_v55 }
 0x9ec   : > { %v793_v47 = vmul.f32 %v1383_v44, %v792_v46  ;;  %v991_v46 = vsel %vm990_vm9, 1, %v1421_v50 }
 0x9ee   : > { %v794_v48 = vadd.f32 %v1383_v44, %v793_v47 }
 0x9f0   : > { %v798_v52 = vsel %vm797_vm14, %v1383_v44, %v794_v48 }
 0x9f1   : > { %v803_v56 = vsel %vm800_vm15, %v802_v53, %v798_v52 }
 0x9f2   : > { %v806_v59 = vmul.f32 %v803_v56, %v755_v58 }
 0xa37   : > { %v809_v54 = vpop.permute.xlu2 %808 }
 0xa38   : > { %v811_v57 = vmul.f32 %v809_v54, %v803_v56 }
 0xa3a   : > { %813 = vrot.lane.b32.xlu1 %v811_v57, %s1420_s14 }
 0xaac   : > { %v814_v60 = vpop.permute.xlu1 %813 }
 0xaad   : > { %v816_v62 = vadd.f32 %v814_v60, %v806_v59 }
 0xaaf   : > { %1384 = vtanh.f32 %v816_v62  ;;  %v838_v27 = vsel %vm829_vm1, %v816_v62, %v755_v58 }
 0xab5   : > { %v1385_v0 = vpop.eup %1384 }
 0xab6   : > { %819 = vrot.lane.b32.xlu2 %v1385_v0, %s1419_s13 }
 0xb10   : > { %v820_v2 = vpop.permute.xlu2 %819 }
 0xb11   : > { %v1705_v3 = vmul.f32 %v820_v2, %v803_v56 }
 0xb13   : > { %v837_v4 = vsel %vm829_vm1, %v1705_v3, %v754_v35 }
 0xb14   : > { %844 = vrot.lane.b32.xlu1 %v837_v4, %s1420_s14 }
 0xb86   : > { %v845_v5 = vpop.permute.xlu1 %844 }
 0xb87   : > { %1304 = vmatmul.msk.f32.vlgmr.msra.gmra.mxu3 %vm350_vm0, %v845_v5 }
 0xc0a   : > { %v865_v7 = vpop.f32.mrf.mxu3 }
 0xc0b   : > { %v868_v8 = vadd.f32 %v865_v7, %v842_v6 }
 0xc0d   : > { %1386 = vtanh.f32 %v868_v8  ;;  %v1305_v12 = vmul.f32 -1.442695, %v868_v8 }
 0xc0f   : > { %1388 = vpow2.f32 %v1305_v12 }
 0xc13   : > { %v1387_v9 = vpop.eup %1386 }
 0xc14   : > { %891 = vrot.lane.b32.xlu2 %v1387_v9, %s1419_s13 }
 0xc15   : > { %v1389_v13 = vpop.eup %1388 }
 0xc16   : > { %v872_v14 = vadd.f32 1.0, %v1389_v13 }
 0xc18   : > { %1390 = vrcp.f32 %v872_v14  ;;  %v884_v20 = vand.u32 2147483648, %v872_v14  ;;  %vm878_vm5 = vweird.f32 %v872_v14  ;;  %v882_v21 = vand.u32 2147483647, %v872_v14 }
 0xc1a   : > { %v885_v23 = vor.u32 1.1754944e-38, %v884_v20  ;;  %vm883_vm7 = vcmp.eq.f32.partialorder %v882_v21, 8.507059e+37  ;;  %v747_v20 = vsel %vm746_vm10, %v1687_v34, 0.0 }
 0xc1c   : > { %910 = vperm.xlu2 %1343, %v908_v11  }
 0xc1e   : > { %v1391_v15 = vpop.eup %1390 }
 0xc1f   : > { %v874_v16 = vmul.f32 %v1391_v15, %v872_v14  ;;  %vm879_vm4 = vweird.f32 %v1391_v15  ;;  %v1008_v14 = vld [vmem:[%s1007_s17] sm:$0xff] }
 0xc20   : > { %vm880_vm6 = vmor %vm878_vm5, %vm879_vm4 }
 0xc21   : > { %v875_v17 = vsub.f32 1.0, %v874_v16 }
 0xc23   : > { %v876_v18 = vmul.f32 %v1391_v15, %v875_v17 }
 0xc25   : > { %v877_v19 = vadd.f32 %v1391_v15, %v876_v18  ;;  %v1072_v18 = vstv %s1761_s10 }
 0xc26   : > { %vm1073_vm4 = vcmp.lt.s32.totalorder %v1072_v18, %v1581_v55 }
 0xc27   : > { %v881_v22 = vsel %vm880_vm6, %v1391_v15, %v877_v19  ;;  %v1074_v19 = vsel %vm1073_vm4, 1, %v1421_v50 }
 0xc28   : > { %v886_v25 = vsel %vm883_vm7, %v885_v23, %v881_v22 }
 0xc29   : > { %v889_v29 = vmul.f32 %v886_v25, %v838_v27 }
 0xc6e   : > { %v892_v24 = vpop.permute.xlu2 %891 }
 0xc6f   : > { %v894_v26 = vmul.f32 %v892_v24, %v886_v25 }
 0xc71   : > { %896 = vrot.lane.b32.xlu0 %v894_v26, %s1420_s14 }
 0xc76   : > { %v1728_v36 = vpop.permute.xlu2 %910 }
 0xc77   : > { %vm912_vm8 = vcmp.eq.s32.totalorder %v1728_v36, 1 }
 0xce3   : > { %v897_v31 = vpop.permute.xlu0 %896 }
 0xce4   : > { %v899_v33 = vadd.f32 %v897_v31, %v889_v29 }
 0xce6   : > { %1392 = vtanh.f32 %v899_v33 }
 0xcec   : > { %v1393_v35 = vpop.eup %1392 }
 0xced   : > { %902 = vrot.lane.b32.xlu1 %v1393_v35, %s1419_s13 }
 0xd5f   : > { %v903_v37 = vpop.permute.xlu1 %902 }
 0xd60   : > { %v1730_v38 = vmul.f32 %v903_v37, %v886_v25 }
 0xd62   : > { %v920_v39 = vsel %vm912_vm8, %v1730_v38, %v837_v4  ;;  %v921_v4 = vsel %vm912_vm8, %v899_v33, %v838_v27 }
 0xd63   : > { %927 = vrot.lane.b32.xlu0 %v920_v39, %s1420_s14 }
 0xdd5   : > { %v928_v40 = vpop.permute.xlu0 %927 }
 0xdd6   : > { %1307 = vmatmul.msk.f32.vlgmr.msrb.gmra.mxu1 %vm350_vm0, %v928_v40  ;;  %v830_v40 = vsel %vm829_vm1, %v1705_v3, 0.0  ;;  %v913_v3 = vsel %vm912_vm8, %v1730_v38, 0.0 }
 0xe53   : > { %v948_v42 = vpop.f32.mrf.mxu1 }
 0xe54   : > { %v951_v43 = vadd.f32 %v948_v42, %v925_v41 }
 0xe56   : > { %1394 = vtanh.f32 %v951_v43  ;;  %v1308_v47 = vmul.f32 -1.442695, %v951_v43 }
 0xe58   : > { %1396 = vpow2.f32 %v1308_v47 }
 0xe5c   : > { %v1395_v44 = vpop.eup %1394 }
 0xe5d   : > { %974 = vrot.lane.b32.xlu1 %v1395_v44, %s1419_s13 }
 0xe5e   : > { %v1397_v48 = vpop.eup %1396 }
 0xe5f   : > { %v955_v49 = vadd.f32 1.0, %v1397_v48 }
 0xe61   : > { %1398 = vrcp.f32 %v955_v49  ;;  %v967_v57 = vand.u32 2147483648, %v955_v49  ;;  %vm961_vm13 = vweird.f32 %v955_v49  ;;  %v965_v58 = vand.u32 2147483647, %v955_v49 }
 0xe63   : > { %v968_v60 = vor.u32 1.1754944e-38, %v967_v57  ;;  %vm966_vm15 = vcmp.eq.f32.partialorder %v965_v58, 8.507059e+37 }
 0xe65   : > { %993 = vperm.xlu1 %1342, %v991_v46  }
 0xe67   : > { %v1399_v51 = vpop.eup %1398 }
 0xe68   : > { %v957_v52 = vmul.f32 %v1399_v51, %v955_v49  ;;  %vm962_vm11 = vweird.f32 %v1399_v51 }
 0xe69   : > { %vm963_vm14 = vmor %vm961_vm13, %vm962_vm11 }
 0xe6a   : > { %v958_v53 = vsub.f32 1.0, %v957_v52 }
 0xe6c   : > { %v959_v54 = vmul.f32 %v1399_v51, %v958_v53 }
 0xe6e   : > { %v960_v56 = vadd.f32 %v1399_v51, %v959_v54 }
 0xe70   : > { %v964_v59 = vsel %vm963_vm14, %v1399_v51, %v960_v56 }
 0xe71   : > { %v969_v0 = vsel %vm966_vm15, %v968_v60, %v964_v59 }
 0xe72   : > { %v972_v5 = vmul.f32 %v969_v0, %v921_v4 }
 0xecf   : > { %v975_v62 = vpop.permute.xlu1 %974 }
 0xed0   : > { %v977_v2 = vmul.f32 %v975_v62, %v969_v0 }
 0xed2   : > { %979 = vrot.lane.b32.xlu2 %v977_v2, %s1420_s14 }
 0xed7   : > { %v994_v9 = vpop.permute.xlu1 %993 }
 0xed8   : > { %vm995_vm2 = vcmp.eq.s32.totalorder %v994_v9, 1 }
 0xf2c   : > { %v980_v6 = vpop.permute.xlu2 %979 }
 0xf2d   : > { %v982_v7 = vadd.f32 %v980_v6, %v972_v5 }
 0xf2f   : > { %1400 = vtanh.f32 %v982_v7  ;;  %v1004_v41 = vsel %vm995_vm2, %v982_v7, %v921_v4 }
 0xf35   : > { %v1401_v8 = vpop.eup %1400 }
 0xf36   : > { %985 = vrot.lane.b32.xlu0 %v1401_v8, %s1419_s13 }
 0xfa8   : > { %v986_v10 = vpop.permute.xlu0 %985 }
 0xfa9   : > { %v988_v11 = vmul.f32 %v986_v10, %v969_v0 }
 0xfab   : > { %v1754_v12 = vsel %vm995_vm2, %v988_v11, %v920_v39  ;;  %v996_v21 = vsel %vm995_vm2, %v988_v11, 0.0  ;;  %v581_v39 = vsel %vm580_vm12, %v1630_v30, 0.0 }
 0xfac   : > { %1010 = vrot.lane.b32.xlu2 %v1754_v12, %s1420_s14 }
0x1006   : > { %v1011_v13 = vpop.permute.xlu2 %1010 }
0x1007   : > { %1310 = vmatmul.msk.f32.vlgmr.msrb.gmra.mxu2 %vm350_vm0, %v1011_v13 }
0x108a   : > { %v1031_v15 = vpop.f32.mrf.mxu2 }
0x108b   : > { %v1034_v16 = vadd.f32 %v1031_v15, %v1008_v14 }
0x108d   : > { %1402 = vtanh.f32 %v1034_v16  ;;  %v1311_v22 = vmul.f32 -1.442695, %v1034_v16 }
0x108f   : > { %1404 = vpow2.f32 %v1311_v22 }
0x1093   : > { %v1403_v17 = vpop.eup %1402 }
0x1094   : > { %1057 = vrot.lane.b32.xlu0 %v1403_v17, %s1419_s13 }
0x1095   : > { %v1405_v23 = vpop.eup %1404 }
0x1096   : > { %v1038_v24 = vadd.f32 1.0, %v1405_v23 }
0x1098   : > { %1406 = vrcp.f32 %v1038_v24  ;;  %v1050_v29 = vand.u32 2147483648, %v1038_v24  ;;  %vm1044_vm6 = vweird.f32 %v1038_v24  ;;  %v1048_v32 = vand.u32 2147483647, %v1038_v24 }
0x109a   : > { %v1051_v31 = vor.u32 1.1754944e-38, %v1050_v29  ;;  %vm1049_vm7 = vcmp.eq.f32.partialorder %v1048_v32, 8.507059e+37 }
0x109c   : > { %1076 = vperm.xlu0 %1344, %v1074_v19  }
0x109e   : > { %v1407_v25 = vpop.eup %1406 }
0x109f   : > { %v1040_v55 = vmul.f32 %v1407_v25, %v1038_v24  ;;  %vm1045_vm5 = vweird.f32 %v1407_v25 }
0x10a0   : > { %vm1046_vm10 = vmor %vm1044_vm6, %vm1045_vm5 }
0x10a1   : > { %v1041_v26 = vsub.f32 1.0, %v1040_v55 }
0x10a3   : > { %v1042_v50 = vmul.f32 %v1407_v25, %v1041_v26 }
0x10a4   : > { %749 = vrot.lane.b32.xlu0 %v747_v20, %s1420_s14 }
0x10a5   : > { %v1043_v27 = vadd.f32 %v1407_v25, %v1042_v50 }
0x10a7   : > { %v1047_v34 = vsel %vm1046_vm10, %v1407_v25, %v1043_v27 }
0x10a8   : > { %v1052_v35 = vsel %vm1049_vm7, %v1051_v31, %v1047_v34 }
0x10a9   : > { %v1055_v43 = vmul.f32 %v1052_v35, %v1004_v41 }
0x10ac   : > { %998 = vrot.lane.b32.xlu0 %v996_v21, %s1420_s14 }
0x1106   : > { %v1058_v33 = vpop.permute.xlu0 %1057 }
0x1107   : > { %v1060_v37 = vmul.f32 %v1058_v33, %v1052_v35 }
0x1109   : > { %1062 = vrot.lane.b32.xlu1 %v1060_v37, %s1420_s14 }
0x110e   : > { %v1077_v42 = vpop.permute.xlu0 %1076 }
0x110f   : > { %vm1078_vm9 = vcmp.eq.s32.totalorder %v1077_v42, 1 }
0x1111   : > { %583 = vrot.lane.b32.xlu1 %v581_v39, %s1420_s14 }
0x1116   : > { %v750_v47 = vpop.permute.xlu0 %749 }
0x1119   : > { %832 = vrot.lane.b32.xlu1 %v830_v40, %s1420_s14 }
0x111e   : > { %v999_v38 = vpop.permute.xlu0 %998 }
0x117b   : > { %v1063_v44 = vpop.permute.xlu1 %1062 }
0x117c   : > { %v1065_v45 = vadd.f32 %v1063_v44, %v1055_v43 }
0x117e   : > { %1408 = vtanh.f32 %v1065_v45  ;;  %v1087_v46 = vsel %vm1078_vm9, %v1065_v45, %v1004_v41 }
0x117f   : > { %1094 = vrot.lane.b32.xlu0 %v1087_v46, %s1422_s25 }
0x1183   : > { %v584_v28 = vpop.permute.xlu1 %583 }
0x1184   : > { %v1409_v30 = vpop.eup %1408  ;;  %587 = vst.msk [vmem:[%s586_s20] sm:$0xff] %vm350_vm0, %v584_v28 }
0x1185   : > { %1068 = vrot.lane.b32.xlu2 %v1409_v30, %s1419_s13  ;;  %s669_s13 = scalar_lea.vmem %s1601_s22, %s1294_s9 }
0x118b   : > { %v833_v51 = vpop.permute.xlu1 %832 }
0x118d   : > { %666 = vrot.lane.b32.xlu2 %v664_v1, %s1420_s14 }
0x1195   : > { %915 = vrot.lane.b32.xlu2 %v913_v3, %s1420_s14 }
0x11df   : > { %v1069_v48 = vpop.permute.xlu2 %1068 }
0x11e0   : > { %v1071_v49 = vmul.f32 %v1069_v48, %v1052_v35 }
0x11e2   : > { %v1086_v61 = vsel %vm1078_vm9, %v1071_v49, %v1754_v12  ;;  %v1079_v63 = vsel %vm1078_vm9, %v1071_v49, 0.0 }
0x11e3   : > { %1089 = vrot.lane.b32.xlu2 %v1086_v61, %s1420_s14  ;;  %1081 = vrot.lane.b32.xlu1 %v1079_v63, %s1420_s14  ;;  %s918_s14 = scalar_lea.vmem %s1601_s22, %s1303_s19 }
0x11e7   : > { %v667_v36 = vpop.permute.xlu2 %666 }
0x11e8   : > { %670 = vst.msk [vmem:[%s669_s13] sm:$0xff] %vm350_vm0, %v667_v36 }
0x11e9   : > { %753 = vst.msk [vmem:[%s752_s27] sm:$0xff] %vm350_vm0, %v750_v47 }
0x11ea   : > { %836 = vst.msk [vmem:[%s835_s28] sm:$0xff] %vm350_vm0, %v833_v51 }
0x11ef   : > { %v916_v52 = vpop.permute.xlu2 %915 }
0x11f0   : > { %919 = vst.msk [vmem:[%s918_s14] sm:$0xff] %vm350_vm0, %v916_v52 }
0x11f1   : > { %1002 = vst.msk [vmem:[%s1001_s8] sm:$0xff] %vm350_vm0, %v999_v38  ;;  %v1095_v53 = vpop.permute.xlu0 %1094 }
0x11f2   : > { %1097 = vst.msk [vmem:[%s333_s11] sm:$0xff] %vm350_vm0, %v1095_v53 }
0x123d   : > { %v1090_v54 = vpop.permute.xlu2 %1089 }
0x123e   : > { %1092 = vst.msk [vmem:[%s329_s26] sm:$0xff] %vm350_vm0, %v1090_v54 }
0x1255   : > { %v1082_v56 = vpop.permute.xlu1 %1081 }
0x1256   : > { %1085 = vst.msk [vmem:[%s1084_s18] sm:$0xff] %vm350_vm0, %v1082_v56 }
0x1257 PF: > { %s18_s24 = sadd.s32 1, %s1416_s24  }
0x1258   : > { %p15_p5 = scmp.ge.s32.totalorder %s18_s24, 4  }
0x125a   :  { %17 = sbr.rel (!%p15_p5) target bundleno = 1 (0x1), region = 116 }

</bundles_post_ra>
